<compile_context>
chip_gen: v7x
topology: tpu7x:2x2x1
jax: 0.10.0
libtpu: 0.0.40
codegen_flags: <defaults>
</compile_context>

<pallas_src>
import numpy as np
import jax
import jax.numpy as jnp
from jax.experimental import pallas as pl
from jax.experimental.pallas import tpu as pltpu

LANE = 128
SUB = 8


def _round_up(x, m):
    return ((x + m - 1) // m) * m


def _pad_to(x, axis, target):
    pad = target - x.shape[axis]
    if pad == 0:
        return x
    widths = [(0, 0)] * x.ndim
    widths[axis] = (0, pad)
    return jnp.pad(x, widths)


# ----------------------------------------------------------------------------
# Kernel 1: the full recurrent decode loop for one batch tile
# ----------------------------------------------------------------------------
def decoder_recurrent_kernel(
    enc_ref,        # (Bt, P, Ep)   encoder features (sorted, padded)
    emb_ref,        # (T, Bt, Embp) token embeddings, time-major
    mask_ref,       # (T, Bt, 1)    float mask: decode_length[b] > t
    w_enc_att_ref,  # (Ep, Ap)
    b_enc_att_ref,  # (1, Ap)
    w_init_hc_ref,  # (Ep, 2*Dp)    [init_h | init_c]
    b_init_hc_ref,  # (1, 2*Dp)
    w_h_ref,        # (Dp, Ap+Ep+4*Dp)  fused h projection [dec_att|f_beta|hh]
    b_h_ref,        # (1, Ap+Ep+4*Dp)
    w_e_ref,        # (Embp, 4*Dp)  emb -> LSTM gates
    w_awe_ref,      # (Ep, 4*Dp)    awe -> LSTM gates
    w_full_ref,     # (1, Ap)
    h_seq_ref,      # out: (T, Bt, Dp)  hidden states (vocab proj done outside)
    alpha_ref,      # out: (T, Bt, P)   attention weights
    h_scr,          # scratch: (Bt, Dp)
    c_scr,          # scratch: (Bt, Dp)
):
    Bt, P, Ep = enc_ref.shape
    T = emb_ref.shape[0]
    Ap = w_enc_att_ref.shape[1]
    Dp = h_scr.shape[1]

    # ---- one-time (per batch tile): encoder attention projection + h0/c0 ----
    enc = enc_ref[...]                                         # (Bt, P, Ep)
    att1 = (jnp.dot(enc.reshape(Bt * P, Ep), w_enc_att_ref[...],
                    preferred_element_type=jnp.float32)
            + b_enc_att_ref[...]).reshape(Bt, P, Ap)
    mean_enc = jnp.mean(enc, axis=1)                           # (Bt, Ep)
    hc0 = (jnp.dot(mean_enc, w_init_hc_ref[...],
                   preferred_element_type=jnp.float32)
           + b_init_hc_ref[...])                               # (Bt, 2*Dp)
    h_scr[...] = hc0[:, :Dp]
    c_scr[...] = hc0[:, Dp:]

    wf = w_full_ref[...].reshape(1, 1, Ap)                     # (1, 1, Ap)

    # ---- time loop (in-kernel; no per-step grid/DMA overhead) ----
    @pl.loop(0, T)
    def _step(t):
        h = h_scr[...]                                         # (Bt, Dp)
        c = c_scr[...]
        emb_t = emb_ref[t]                                     # (Bt, Embp)

        # One fused MXU push on h: att2 | f_beta pre-gate | hidden part of gates.
        proj_h = (jnp.dot(h, w_h_ref[...],
                          preferred_element_type=jnp.float32)
                  + b_h_ref[...])                              # (Bt, Ap+Ep+4Dp)
        att2 = proj_h[:, :Ap]
        gate = jax.nn.sigmoid(proj_h[:, Ap:Ap + Ep])           # (Bt, Ep)
        gates_h = proj_h[:, Ap + Ep:]                          # (Bt, 4*Dp)

        # Attention scores + softmax over pixels.
        # (full_att bias omitted: softmax is shift-invariant.)
        e = jnp.maximum(att1 + att2[:, None, :], 0.0)          # (Bt, P, Ap)
        score = jnp.sum(e * wf, axis=-1)                       # (Bt, P)
        score = score - jnp.max(score, axis=1, keepdims=True)
        ex = jnp.exp(score)
        alpha = ex / jnp.sum(ex, axis=1, keepdims=True)        # (Bt, P)

        # Attention-weighted encoding on the MXU (batched matmul over pixels).
        awe = jnp.einsum('bqp,bpe->bqe', alpha[:, None, :], enc,
                         preferred_element_type=jnp.float32)[:, 0, :]  # (Bt, Ep)
        awe = gate * awe

        # LSTMCell (gate order i, f, g, o; Dp is 128-aligned so slices are free).
        gates = (gates_h
                 + jnp.dot(emb_t, w_e_ref[...],
                           preferred_element_type=jnp.float32)
                 + jnp.dot(awe, w_awe_ref[...],
                           preferred_element_type=jnp.float32))
        i_g = jax.nn.sigmoid(gates[:, 0:Dp])
        f_g = jax.nn.sigmoid(gates[:, Dp:2 * Dp])
        g_g = jnp.tanh(gates[:, 2 * Dp:3 * Dp])
        o_g = jax.nn.sigmoid(gates[:, 3 * Dp:4 * Dp])
        c_new = f_g * c + i_g * g_g
        h_new = o_g * jnp.tanh(c_new)

        h_scr[...] = h_new
        c_scr[...] = c_new

        h_seq_ref[t] = h_new                                   # mask applied in fc kernel
        alpha_ref[t] = alpha * mask_ref[t]


# ----------------------------------------------------------------------------
# Kernel 2: lane-dense vocabulary projection over all (t, b) rows at once
# ----------------------------------------------------------------------------
def fc_projection_kernel(h_ref, m_ref, w_ref, b_ref, o_ref):
    o_ref[...] = (jnp.dot(h_ref[...], w_ref[...],
                          preferred_element_type=jnp.float32)
                  + b_ref[...]) * m_ref[...]


# ----------------------------------------------------------------------------
# Weight packing / padding (done once in the wrapper)
# ----------------------------------------------------------------------------
def _pack_weights(params):
    E, A = params["w_enc_att"].shape
    D = params["w_init_h"].shape[1]
    Emb = params["w_ih_e"].shape[0]
    V = params["w_fc"].shape[1]
    Ep, Ap, Dp, Embp, Vp = (_round_up(x, LANE) for x in (E, A, D, Emb, V))
    f32 = jnp.float32

    def pad2(w, r, c):
        return _pad_to(_pad_to(w.astype(f32), 0, r), 1, c)

    def pad_gate_cols(w, rows_to):
        # (rows, 4*D) gate-major (i,f,g,o) -> pad rows and per-gate cols to Dp.
        rws = w.shape[0]
        w4 = w.astype(f32).reshape(rws, 4, D)
        w4 = jnp.pad(w4, ((0, rows_to - rws), (0, 0), (0, Dp - D)))
        return w4.reshape(rows_to, 4 * Dp)

    w_enc_att = pad2(params["w_enc_att"], Ep, Ap)
    b_enc_att = pad2(params["b_enc_att"], 1, Ap)
    w_init_hc = jnp.concatenate(
        [pad2(params["w_init_h"], Ep, Dp), pad2(params["w_init_c"], Ep, Dp)], axis=1)
    b_init_hc = jnp.concatenate(
        [pad2(params["b_init_h"], 1, Dp), pad2(params["b_init_c"], 1, Dp)], axis=1)

    # Fused per-step weight acting on h:  [ W_dec_att | W_f_beta | W_hh ]
    w_hh = pad_gate_cols(params["w_hh"], Dp)
    w_dec_att = pad2(params["w_dec_att"], Dp, Ap)
    w_fbeta = pad2(params["w_fbeta"], Dp, Ep)
    w_h = jnp.concatenate([w_dec_att, w_fbeta, w_hh], axis=1)   # (Dp, Ap+Ep+4Dp)

    b_gates = pad_gate_cols(params["b_ih"] + params["b_hh"], 1)
    b_h = jnp.concatenate(
        [pad2(params["b_dec_att"], 1, Ap), pad2(params["b_fbeta"], 1, Ep), b_gates],
        axis=1)

    w_e = pad_gate_cols(params["w_ih_e"], Embp)                # (Embp, 4Dp)
    w_awe = pad_gate_cols(params["w_ih_a"], Ep)                # (Ep, 4Dp)
    w_full = pad2(params["w_full"], 1, Ap)                     # (1, Ap)

    w_fc = pad2(params["w_fc"], Dp, Vp)
    b_fc = pad2(params["b_fc"], 1, Vp)

    packed = dict(w_enc_att=w_enc_att, b_enc_att=b_enc_att,
                  w_init_hc=w_init_hc, b_init_hc=b_init_hc,
                  w_h=w_h, b_h=b_h, w_e=w_e, w_awe=w_awe, w_full=w_full,
                  w_fc=w_fc, b_fc=b_fc)
    dims = dict(E=E, A=A, D=D, Emb=Emb, V=V,
                Ep=Ep, Ap=Ap, Dp=Dp, Embp=Embp, Vp=Vp)
    return packed, dims


# ----------------------------------------------------------------------------
# pallas_call wrappers
# ----------------------------------------------------------------------------
def run_decoder_kernel(packed, dims, enc_p, emb_p, mask_p, t_max):
    Bp, P, Ep = enc_p.shape
    Dp, Embp, Vp = dims["Dp"], dims["Embp"], dims["Vp"]
    B_TILE = Bp if Bp <= 128 else 128
    n_btiles = Bp // B_TILE

    def full_spec(shape):
        zeros = (0,) * len(shape)
        return pl.BlockSpec(shape, lambda i, _z=zeros: _z)

    weight_order = ["w_enc_att", "b_enc_att", "w_init_hc", "b_init_hc",
                    "w_h", "b_h", "w_e", "w_awe", "w_full"]
    weight_args = [packed[k] for k in weight_order]

    in_specs = (
        [pl.BlockSpec((B_TILE, P, Ep), lambda i: (i, 0, 0)),        # encoder tile
         pl.BlockSpec((t_max, B_TILE, Embp), lambda i: (0, i, 0)),  # embeddings
         pl.BlockSpec((t_max, B_TILE, 1), lambda i: (0, i, 0))]     # mask
        + [full_spec(w.shape) for w in weight_args]
    )
    out_shapes = (
        jax.ShapeDtypeStruct((t_max, Bp, Dp), jnp.float32),
        jax.ShapeDtypeStruct((t_max, Bp, P), jnp.float32),
    )
    out_specs = [
        pl.BlockSpec((t_max, B_TILE, Dp), lambda i: (0, i, 0)),
        pl.BlockSpec((t_max, B_TILE, P), lambda i: (0, i, 0)),
    ]

    grid_spec = pltpu.PrefetchScalarGridSpec(
        num_scalar_prefetch=0,
        grid=(n_btiles,),
        in_specs=in_specs,
        out_specs=out_specs,
        scratch_shapes=[pltpu.VMEM((B_TILE, Dp), jnp.float32),   # h
                        pltpu.VMEM((B_TILE, Dp), jnp.float32)],  # c
    )
    h_seq, alphas_p = pl.pallas_call(
        decoder_recurrent_kernel,
        out_shape=out_shapes,
        grid_spec=grid_spec,
        compiler_params=pltpu.CompilerParams(
            dimension_semantics=("parallel",)),  # batch tiles -> 2 TCs on v7x
    )(enc_p, emb_p, mask_p, *weight_args)

    # Vocabulary projection: one big lane-dense GEMM over all (t, b) rows.
    M = t_max * Bp
    h_flat = h_seq.reshape(M, Dp)
    mask_flat = mask_p.reshape(M, 1)
    TV = LANE
    n_vtiles = Vp // TV

    fc_grid_spec = pltpu.PrefetchScalarGridSpec(
        num_scalar_prefetch=0,
        grid=(n_vtiles,),
        in_specs=[
            pl.BlockSpec((M, Dp), lambda j: (0, 0)),
            pl.BlockSpec((M, 1), lambda j: (0, 0)),
            pl.BlockSpec((Dp, TV), lambda j: (0, j)),
            pl.BlockSpec((1, TV), lambda j: (0, j)),
        ],
        out_specs=pl.BlockSpec((M, TV), lambda j: (0, j)),
    )
    preds_flat = pl.pallas_call(
        fc_projection_kernel,
        out_shape=jax.ShapeDtypeStruct((M, Vp), jnp.float32),
        grid_spec=fc_grid_spec,
        compiler_params=pltpu.CompilerParams(
            dimension_semantics=("parallel",)),
    )(h_flat, mask_flat, packed["w_fc"], packed["b_fc"])

    preds_tm = preds_flat.reshape(t_max, Bp, Vp)
    return preds_tm, alphas_p


# ----------------------------------------------------------------------------
# Wrapper reproducing DecoderWithAttention.forward (glue in plain JAX / numpy)
# ----------------------------------------------------------------------------
def decoder_forward(params, encoder_out, encoded_captions, caption_lengths_np):
    B = encoder_out.shape[0]
    E = encoder_out.shape[-1]
    enc = encoder_out.reshape(B, -1, E)                        # (B, P, E)

    # host-side length sort (matches torch.sort descending; data-dependent
    # loop bound max(decode_lengths) is resolved on host, as in PyTorch)
    caplens_np = np.asarray(caption_lengths_np).reshape(-1)
    sort_ind_np = np.argsort(-caplens_np, kind="stable")
    dlens_np = caplens_np[sort_ind_np] - 1
    t_max = int(dlens_np.max())
    sort_ind = jnp.asarray(sort_ind_np)

    enc_sorted = enc[sort_ind]
    caps_sorted = encoded_captions[sort_ind]

    packed, dims = _pack_weights(params)
    V = dims["V"]
    Bp = _round_up(B, SUB)
    if Bp > 128:
        Bp = _round_up(B, 128)

    # pad activations: extra batch rows are fully masked, feature pads are zero
    enc_p = _pad_to(_pad_to(enc_sorted.astype(jnp.float32), 2, dims["Ep"]), 0, Bp)
    emb = params["embedding"][caps_sorted][:, :t_max, :]       # (B, T, Emb) gather (glue)
    emb_tm = jnp.transpose(emb, (1, 0, 2)).astype(jnp.float32)  # (T, B, Emb)
    emb_p = _pad_to(_pad_to(emb_tm, 2, dims["Embp"]), 1, Bp)

    mask_np = (dlens_np[None, :] > np.arange(t_max)[:, None]).astype(np.float32)
    mask_np = np.pad(mask_np, ((0, 0), (0, Bp - B)))
    mask_p = jnp.asarray(mask_np).reshape(t_max, Bp, 1)

    preds_tm, alphas_tm = run_decoder_kernel(packed, dims, enc_p, emb_p, mask_p, t_max)

    predictions = jnp.transpose(preds_tm[:, :B, :V], (1, 0, 2))  # (B, T, V)
    alphas = jnp.transpose(alphas_tm[:, :B, :], (1, 0, 2))       # (B, T, P)
    decode_lengths = [int(x) for x in dlens_np]
    return predictions, caps_sorted, decode_lengths, alphas


# ----------------------------------------------------------------------------
# Pure-JAX reference (same math, no Pallas) for a correctness check
# ----------------------------------------------------------------------------
def decoder_forward_reference(params, encoder_out, encoded_captions, caption_lengths_np):
    B = encoder_out.shape[0]
    E = encoder_out.shape[-1]
    enc = encoder_out.reshape(B, -1, E)
    caplens_np = np.asarray(caption_lengths_np).reshape(-1)
    sort_ind_np = np.argsort(-caplens_np, kind="stable")
    dlens_np = caplens_np[sort_ind_np] - 1
    t_max = int(dlens_np.max())
    sort_ind = jnp.asarray(sort_ind_np)
    enc = enc[sort_ind]
    caps_sorted = encoded_captions[sort_ind]
    embeddings = params["embedding"][caps_sorted]
    dlen = jnp.asarray(dlens_np.copy(), jnp.int32).reshape(B, 1)

    D = params["w_init_h"].shape[1]
    att1 = jnp.einsum("bpe,ea->bpa", enc, params["w_enc_att"]) + params["b_enc_att"]
    mean_enc = jnp.mean(enc, axis=1)
    h = jnp.dot(mean_enc, params["w_init_h"]) + params["b_init_h"]
    c = jnp.dot(mean_enc, params["w_init_c"]) + params["b_init_c"]

    preds_list, alpha_list = [], []
    for t in range(t_max):
        att2 = jnp.dot(h, params["w_dec_att"]) + params["b_dec_att"]
        e = jnp.maximum(att1 + att2[:, None, :], 0.0)
        att = jnp.sum(e * params["w_full"][0][None, None, :], axis=-1) + params["b_full"][0, 0]
        alpha = jax.nn.softmax(att, axis=1)
        awe = jnp.einsum("bp,bpe->be", alpha, enc)
        gate = jax.nn.sigmoid(jnp.dot(h, params["w_fbeta"]) + params["b_fbeta"])
        awe = gate * awe
        emb_t = embeddings[:, t, :]
        gates = (jnp.dot(emb_t, params["w_ih_e"])
                 + jnp.dot(awe, params["w_ih_a"])
                 + params["b_ih"]
                 + jnp.dot(h, params["w_hh"])
                 + params["b_hh"])
        i_g = jax.nn.sigmoid(gates[:, 0:D])
        f_g = jax.nn.sigmoid(gates[:, D:2 * D])
        g_g = jnp.tanh(gates[:, 2 * D:3 * D])
        o_g = jax.nn.sigmoid(gates[:, 3 * D:4 * D])
        c = f_g * c + i_g * g_g
        h = o_g * jnp.tanh(c)
        preds = jnp.dot(h, params["w_fc"]) + params["b_fc"]
        mask = dlen > t
        preds_list.append(jnp.where(mask, preds, 0.0))
        alpha_list.append(jnp.where(mask, alpha, 0.0))

    predictions = jnp.stack(preds_list, axis=1)
    alphas = jnp.stack(alpha_list, axis=1)
    return predictions, caps_sorted, [int(x) for x in dlens_np], alphas


# ----------------------------------------------------------------------------
# Deterministic parameter construction
# ----------------------------------------------------------------------------
def make_params(key, *, encoder_dim, attention_dim, embed_dim, decoder_dim, vocab_size):
    ks = jax.random.split(key, 32)
    u = lambda k, shape, s=0.1: jax.random.uniform(k, shape, jnp.float32, -s, s)
    return {
        "embedding": u(ks[0], (vocab_size, embed_dim)),
        # Attention
        "w_enc_att": u(ks[1], (encoder_dim, attention_dim)),
        "b_enc_att": u(ks[2], (1, attention_dim)),
        "w_dec_att": u(ks[3], (decoder_dim, attention_dim)),
        "b_dec_att": u(ks[4], (1, attention_dim)),
        "w_full":    u(ks[5], (1, attention_dim)),
        "b_full":    u(ks[6], (1, 1)),
        # init_h / init_c
        "w_init_h":  u(ks[7], (encoder_dim, decoder_dim)),
        "b_init_h":  u(ks[8], (1, decoder_dim)),
        "w_init_c":  u(ks[9], (encoder_dim, decoder_dim)),
        "b_init_c":  u(ks[10], (1, decoder_dim)),
        # f_beta
        "w_fbeta":   u(ks[11], (decoder_dim, encoder_dim)),
        "b_fbeta":   u(ks[12], (1, encoder_dim)),
        # LSTMCell (input-to-hidden split into embedding part and attention part)
        "w_ih_e":    u(ks[13], (embed_dim, 4 * decoder_dim)),
        "w_ih_a":    u(ks[14], (encoder_dim, 4 * decoder_dim)),
        "b_ih":      u(ks[15], (1, 4 * decoder_dim)),
        "w_hh":      u(ks[16], (decoder_dim, 4 * decoder_dim)),
        "b_hh":      u(ks[17], (1, 4 * decoder_dim)),
        # fc
        "w_fc":      u(ks[18], (decoder_dim, vocab_size)),
        "b_fc":      jnp.zeros((1, vocab_size), jnp.float32),
    }


if __name__ == "__main__":
    # small but representative sizes
    B = 4
    enc_image_size = 4            # -> num_pixels P = 16
    encoder_dim = 32
    attention_dim = 32
    embed_dim = 16
    decoder_dim = 32
    vocab_size = 64
    max_cap_len = 8

    key = jax.random.PRNGKey(0)
    k_par, k_enc, k_cap = jax.random.split(key, 3)

    params = make_params(k_par,
                         encoder_dim=encoder_dim, attention_dim=attention_dim,
                         embed_dim=embed_dim, decoder_dim=decoder_dim,
                         vocab_size=vocab_size)

    encoder_out = jax.random.normal(
        k_enc, (B, enc_image_size, enc_image_size, encoder_dim), jnp.float32)
    encoded_captions = jax.random.randint(
        k_cap, (B, max_cap_len), 0, vocab_size, jnp.int32)
    caption_lengths = np.array([[5], [8], [3], [6]], dtype=np.int32)  # (B, 1)

    preds, caps_sorted, decode_lengths, alphas = decoder_forward(
        params, encoder_out, encoded_captions, caption_lengths)
    jax.block_until_ready(preds)
    jax.block_until_ready(alphas)

    preds_ref, caps_ref, dlens_ref, alphas_ref = decoder_forward_reference(
        params, encoder_out, encoded_captions, caption_lengths)

    np.testing.assert_allclose(np.asarray(preds), np.asarray(preds_ref),
                               rtol=2e-2, atol=2e-2)
    np.testing.assert_allclose(np.asarray(alphas), np.asarray(alphas_ref),
                               rtol=2e-2, atol=2e-2)
    np.testing.assert_array_equal(np.asarray(caps_sorted), np.asarray(caps_ref))
    assert decode_lengths == dlens_ref

    print("KERNEL_OK")
</pallas_src>

<mosaic_0001>
module attributes {stable_mosaic.version = 11 : i64} {
  func.func @decoder_recurrent_kernel(%arg0: i32, %arg1: memref<8x16x128xf32, #tpu.memory_space<vmem>>, %arg2: memref<7x8x128xf32, #tpu.memory_space<vmem>>, %arg3: memref<7x8x1xf32, #tpu.memory_space<vmem>>, %arg4: memref<128x128xf32, #tpu.memory_space<vmem>>, %arg5: memref<1x128xf32, #tpu.memory_space<vmem>>, %arg6: memref<128x256xf32, #tpu.memory_space<vmem>>, %arg7: memref<1x256xf32, #tpu.memory_space<vmem>>, %arg8: memref<128x768xf32, #tpu.memory_space<vmem>>, %arg9: memref<1x768xf32, #tpu.memory_space<vmem>>, %arg10: memref<128x512xf32, #tpu.memory_space<vmem>>, %arg11: memref<128x512xf32, #tpu.memory_space<vmem>>, %arg12: memref<1x128xf32, #tpu.memory_space<vmem>>, %arg13: memref<7x8x128xf32, #tpu.memory_space<vmem>>, %arg14: memref<7x8x16xf32, #tpu.memory_space<vmem>>, %arg15: memref<8x128xf32, #tpu.memory_space<vmem>>, %arg16: memref<8x128xf32, #tpu.memory_space<vmem>>) attributes {dimension_semantics = [#tpu.dimension_semantics<parallel>], iteration_bounds = array<i64: 1>, scalar_prefetch = 0 : i64, scratch_operands = 2 : i64, tpu.core_type = #tpu.core_type<tc>, window_params = [{transform_indices = @transform_0, window_bounds = array<i64: 8, 16, 128>}, {transform_indices = @transform_1, window_bounds = array<i64: 7, 8, 128>}, {transform_indices = @transform_2, window_bounds = array<i64: 7, 8, 1>}, {pipeline_mode = #tpu.pipeline_mode<synchronous>, transform_indices = @transform_3, window_bounds = array<i64: 128, 128>}, {pipeline_mode = #tpu.pipeline_mode<synchronous>, transform_indices = @transform_4, window_bounds = array<i64: 1, 128>}, {pipeline_mode = #tpu.pipeline_mode<synchronous>, transform_indices = @transform_5, window_bounds = array<i64: 128, 256>}, {pipeline_mode = #tpu.pipeline_mode<synchronous>, transform_indices = @transform_6, window_bounds = array<i64: 1, 256>}, {pipeline_mode = #tpu.pipeline_mode<synchronous>, transform_indices = @transform_7, window_bounds = array<i64: 128, 768>}, {pipeline_mode = #tpu.pipeline_mode<synchronous>, transform_indices = @transform_8, window_bounds = array<i64: 1, 768>}, {pipeline_mode = #tpu.pipeline_mode<synchronous>, transform_indices = @transform_9, window_bounds = array<i64: 128, 512>}, {pipeline_mode = #tpu.pipeline_mode<synchronous>, transform_indices = @transform_10, window_bounds = array<i64: 128, 512>}, {pipeline_mode = #tpu.pipeline_mode<synchronous>, transform_indices = @transform_11, window_bounds = array<i64: 1, 128>}, {transform_indices = @transform_12, window_bounds = array<i64: 7, 8, 128>}, {transform_indices = @transform_13, window_bounds = array<i64: 7, 8, 16>}]} {
    %c0 = arith.constant 0 : index
    %c0_0 = arith.constant 0 : index
    %c0_1 = arith.constant 0 : index
    %0 = vector.load %arg1[%c0, %c0_0, %c0_1] : memref<8x16x128xf32, #tpu.memory_space<vmem>>, vector<8x16x128xf32>
    %1 = vector.shape_cast %0 : vector<8x16x128xf32> to vector<128x128xf32>
    %c0_2 = arith.constant 0 : index
    %c0_3 = arith.constant 0 : index
    %2 = vector.load %arg4[%c0_2, %c0_3] : memref<128x128xf32, #tpu.memory_space<vmem>>, vector<128x128xf32>
    %cst = arith.constant dense<0.000000e+00> : vector<128x128xf32>
    %3 = tpu.matmul %1, %2, %cst {dimension_numbers = #tpu.dot_dimension_numbers<[1], [0], [0], [1], [0, 0, 1, 1], [], []>} : vector<128x128xf32>, vector<128x128xf32>, vector<128x128xf32> -> vector<128x128xf32>
    %c0_4 = arith.constant 0 : index
    %c0_5 = arith.constant 0 : index
    %4 = vector.load %arg5[%c0_4, %c0_5] : memref<1x128xf32, #tpu.memory_space<vmem>>, vector<1x128xf32>
    %5 = vector.broadcast %4 : vector<1x128xf32> to vector<128x128xf32>
    %6 = arith.addf %3, %5 : vector<128x128xf32>
    %7 = vector.shape_cast %6 : vector<128x128xf32> to vector<8x16x128xf32>
    %cst_6 = arith.constant dense<0.000000e+00> : vector<8x128xf32>
    %8 = vector.multi_reduction <add>, %0, %cst_6 [1] : vector<8x16x128xf32> to vector<8x128xf32>
    %cst_7 = arith.constant 1.600000e+01 : f32
    %9 = vector.broadcast %cst_7 : f32 to vector<8x128xf32>
    %10 = arith.divf %8, %9 : vector<8x128xf32>
    %c0_8 = arith.constant 0 : index
    %c0_9 = arith.constant 0 : index
    %11 = vector.load %arg6[%c0_8, %c0_9] : memref<128x256xf32, #tpu.memory_space<vmem>>, vector<128x256xf32>
    %cst_10 = arith.constant dense<0.000000e+00> : vector<8x256xf32>
    %12 = tpu.matmul %10, %11, %cst_10 {dimension_numbers = #tpu.dot_dimension_numbers<[1], [0], [0], [1], [0, 0, 1, 1], [], []>} : vector<8x128xf32>, vector<128x256xf32>, vector<8x256xf32> -> vector<8x256xf32>
    %c0_11 = arith.constant 0 : index
    %c0_12 = arith.constant 0 : index
    %13 = vector.load %arg7[%c0_11, %c0_12] : memref<1x256xf32, #tpu.memory_space<vmem>>, vector<1x256xf32>
    %14 = vector.broadcast %13 : vector<1x256xf32> to vector<8x256xf32>
    %15 = arith.addf %12, %14 : vector<8x256xf32>
    %16 = vector.extract_strided_slice %15 {offsets = [0, 0], sizes = [8, 128], strides = [1, 1]} : vector<8x256xf32> to vector<8x128xf32>
    %c0_13 = arith.constant 0 : index
    %c0_14 = arith.constant 0 : index
    %17 = vector.load %arg15[%c0_13, %c0_14] : memref<8x128xf32, #tpu.memory_space<vmem>>, vector<8x128xf32>
    tpu.vector_store %arg15[%c0_13, %c0_14], %16 {strides = array<i32>} : memref<8x128xf32, #tpu.memory_space<vmem>>, vector<8x128xf32>,
    %18 = vector.extract_strided_slice %15 {offsets = [0, 128], sizes = [8, 128], strides = [1, 1]} : vector<8x256xf32> to vector<8x128xf32>
    %c0_15 = arith.constant 0 : index
    %c0_16 = arith.constant 0 : index
    %19 = vector.load %arg16[%c0_15, %c0_16] : memref<8x128xf32, #tpu.memory_space<vmem>>, vector<8x128xf32>
    tpu.vector_store %arg16[%c0_15, %c0_16], %18 {strides = array<i32>} : memref<8x128xf32, #tpu.memory_space<vmem>>, vector<8x128xf32>,
    %c0_17 = arith.constant 0 : index
    %c0_18 = arith.constant 0 : index
    %20 = vector.load %arg12[%c0_17, %c0_18] : memref<1x128xf32, #tpu.memory_space<vmem>>, vector<1x128xf32>
    %21 = vector.shape_cast %20 : vector<1x128xf32> to vector<1x1x128xf32>
    %c0_i32 = arith.constant 0 : i32
    %c7_i32 = arith.constant 7 : i32
    %22 = arith.addi %c0_i32, %c7_i32 : i32
    %c1_i32 = arith.constant 1 : i32
    scf.for %arg17 = %c0_i32 to %22 step %c1_i32  : i32 {
      %c1_i32_20 = arith.constant 1 : i32
      %23 = arith.muli %arg17, %c1_i32_20 : i32
      %c0_i32_21 = arith.constant 0 : i32
      %24 = arith.addi %c0_i32_21, %23 : i32
      %c0_22 = arith.constant 0 : index
      %c0_23 = arith.constant 0 : index
      %25 = vector.load %arg15[%c0_22, %c0_23] : memref<8x128xf32, #tpu.memory_space<vmem>>, vector<8x128xf32>
      %c0_24 = arith.constant 0 : index
      %c0_25 = arith.constant 0 : index
      %26 = vector.load %arg16[%c0_24, %c0_25] : memref<8x128xf32, #tpu.memory_space<vmem>>, vector<8x128xf32>
      %27 = arith.index_cast %24 : i32 to index
      %c0_26 = arith.constant 0 : index
      %c0_27 = arith.constant 0 : index
      %28 = vector.load %arg2[%27, %c0_26, %c0_27] : memref<7x8x128xf32, #tpu.memory_space<vmem>>, vector<1x8x128xf32>
      %29 = vector.shape_cast %28 : vector<1x8x128xf32> to vector<8x128xf32>
      %c0_28 = arith.constant 0 : index
      %c0_29 = arith.constant 0 : index
      %30 = vector.load %arg8[%c0_28, %c0_29] : memref<128x768xf32, #tpu.memory_space<vmem>>, vector<128x768xf32>
      %cst_30 = arith.constant dense<0.000000e+00> : vector<8x768xf32>
      %31 = tpu.matmul %25, %30, %cst_30 {dimension_numbers = #tpu.dot_dimension_numbers<[1], [0], [0], [1], [0, 0, 1, 1], [], []>} : vector<8x128xf32>, vector<128x768xf32>, vector<8x768xf32> -> vector<8x768xf32>
      %c0_31 = arith.constant 0 : index
      %c0_32 = arith.constant 0 : index
      %32 = vector.load %arg9[%c0_31, %c0_32] : memref<1x768xf32, #tpu.memory_space<vmem>>, vector<1x768xf32>
      %33 = vector.broadcast %32 : vector<1x768xf32> to vector<8x768xf32>
      %34 = arith.addf %31, %33 : vector<8x768xf32>
      %35 = vector.extract_strided_slice %34 {offsets = [0, 0], sizes = [8, 128], strides = [1, 1]} : vector<8x768xf32> to vector<8x128xf32>
      %36 = vector.extract_strided_slice %34 {offsets = [0, 128], sizes = [8, 128], strides = [1, 1]} : vector<8x768xf32> to vector<8x128xf32>
      %37 = arith.negf %36 : vector<8x128xf32>
      %38 = math.exp %37 : vector<8x128xf32>
      %cst_33 = arith.constant 1.000000e+00 : f32
      %39 = vector.broadcast %cst_33 : f32 to vector<8x128xf32>
      %40 = arith.addf %39, %38 : vector<8x128xf32>
      %41 = arith.divf %39, %40 : vector<8x128xf32>
      %42 = vector.extract_strided_slice %34 {offsets = [0, 256], sizes = [8, 512], strides = [1, 1]} : vector<8x768xf32> to vector<8x512xf32>
      %43 = vector.shape_cast %35 : vector<8x128xf32> to vector<8x1x128xf32>
      %44 = vector.broadcast %43 : vector<8x1x128xf32> to vector<8x16x128xf32>
      %45 = arith.addf %7, %44 : vector<8x16x128xf32>
      %cst_34 = arith.constant 0.000000e+00 : f32
      %46 = vector.broadcast %cst_34 : f32 to vector<8x16x128xf32>
      %47 = arith.maximumf %45, %46 : vector<8x16x128xf32>
      %48 = vector.broadcast %21 : vector<1x1x128xf32> to vector<8x16x128xf32>
      %49 = arith.mulf %47, %48 : vector<8x16x128xf32>
      %cst_35 = arith.constant dense<0.000000e+00> : vector<8x16xf32>
      %50 = vector.multi_reduction <add>, %49, %cst_35 [2] : vector<8x16x128xf32> to vector<8x16xf32>
      %cst_36 = arith.constant dense<0xFF800000> : vector<8xf32>
      %51 = vector.multi_reduction <maximumf>, %50, %cst_36 [1] : vector<8x16xf32> to vector<8xf32>
      %52 = vector.shape_cast %51 : vector<8xf32> to vector<8x1xf32>
      %53 = vector.broadcast %52 : vector<8x1xf32> to vector<8x16xf32>
      %54 = arith.subf %50, %53 : vector<8x16xf32>
      %55 = math.exp %54 : vector<8x16xf32>
      %cst_37 = arith.constant dense<0.000000e+00> : vector<8xf32>
      %56 = vector.multi_reduction <add>, %55, %cst_37 [1] : vector<8x16xf32> to vector<8xf32>
      %57 = vector.shape_cast %56 : vector<8xf32> to vector<8x1xf32>
      %58 = vector.broadcast %57 : vector<8x1xf32> to vector<8x16xf32>
      %59 = arith.divf %55, %58 : vector<8x16xf32>
      %60 = vector.shape_cast %59 : vector<8x16xf32> to vector<8x1x16xf32>
      "tpu.trace_start"() <{level = 10 : i32, message = "bqp,bpe->bqe"}> : () -> ()
      %cst_38 = arith.constant dense<0.000000e+00> : vector<8x1x128xf32>
      %61 = tpu.matmul %60, %0, %cst_38 {dimension_numbers = #tpu.dot_dimension_numbers<[2], [1], [1], [2], [0, 0, 0, 1, 1, 2], [0], [0]>} : vector<8x1x16xf32>, vector<8x16x128xf32>, vector<8x1x128xf32> -> vector<8x1x128xf32>
      "tpu.trace_stop"() : () -> ()
      %62 = vector.shape_cast %61 : vector<8x1x128xf32> to vector<8x128xf32>
      %63 = arith.mulf %41, %62 : vector<8x128xf32>
      %c0_39 = arith.constant 0 : index
      %c0_40 = arith.constant 0 : index
      %64 = vector.load %arg10[%c0_39, %c0_40] : memref<128x512xf32, #tpu.memory_space<vmem>>, vector<128x512xf32>
      %cst_41 = arith.constant dense<0.000000e+00> : vector<8x512xf32>
      %65 = tpu.matmul %29, %64, %cst_41 {dimension_numbers = #tpu.dot_dimension_numbers<[1], [0], [0], [1], [0, 0, 1, 1], [], []>} : vector<8x128xf32>, vector<128x512xf32>, vector<8x512xf32> -> vector<8x512xf32>
      %66 = arith.addf %42, %65 : vector<8x512xf32>
      %c0_42 = arith.constant 0 : index
      %c0_43 = arith.constant 0 : index
      %67 = vector.load %arg11[%c0_42, %c0_43] : memref<128x512xf32, #tpu.memory_space<vmem>>, vector<128x512xf32>
      %cst_44 = arith.constant dense<0.000000e+00> : vector<8x512xf32>
      %68 = tpu.matmul %63, %67, %cst_44 {dimension_numbers = #tpu.dot_dimension_numbers<[1], [0], [0], [1], [0, 0, 1, 1], [], []>} : vector<8x128xf32>, vector<128x512xf32>, vector<8x512xf32> -> vector<8x512xf32>
      %69 = arith.addf %66, %68 : vector<8x512xf32>
      %70 = vector.extract_strided_slice %69 {offsets = [0, 0], sizes = [8, 128], strides = [1, 1]} : vector<8x512xf32> to vector<8x128xf32>
      %71 = arith.negf %70 : vector<8x128xf32>
      %72 = math.exp %71 : vector<8x128xf32>
      %cst_45 = arith.constant 1.000000e+00 : f32
      %73 = vector.broadcast %cst_45 : f32 to vector<8x128xf32>
      %74 = arith.addf %73, %72 : vector<8x128xf32>
      %75 = arith.divf %73, %74 : vector<8x128xf32>
      %76 = vector.extract_strided_slice %69 {offsets = [0, 128], sizes = [8, 128], strides = [1, 1]} : vector<8x512xf32> to vector<8x128xf32>
      %77 = arith.negf %76 : vector<8x128xf32>
      %78 = math.exp %77 : vector<8x128xf32>
      %cst_46 = arith.constant 1.000000e+00 : f32
      %79 = vector.broadcast %cst_46 : f32 to vector<8x128xf32>
      %80 = arith.addf %79, %78 : vector<8x128xf32>
      %81 = arith.divf %79, %80 : vector<8x128xf32>
      %82 = vector.extract_strided_slice %69 {offsets = [0, 256], sizes = [8, 128], strides = [1, 1]} : vector<8x512xf32> to vector<8x128xf32>
      %83 = math.tanh %82 : vector<8x128xf32>
      %84 = vector.extract_strided_slice %69 {offsets = [0, 384], sizes = [8, 128], strides = [1, 1]} : vector<8x512xf32> to vector<8x128xf32>
      %85 = arith.negf %84 : vector<8x128xf32>
      %86 = math.exp %85 : vector<8x128xf32>
      %cst_47 = arith.constant 1.000000e+00 : f32
      %87 = vector.broadcast %cst_47 : f32 to vector<8x128xf32>
      %88 = arith.addf %87, %86 : vector<8x128xf32>
      %89 = arith.divf %87, %88 : vector<8x128xf32>
      %90 = arith.mulf %81, %26 : vector<8x128xf32>
      %91 = arith.mulf %75, %83 : vector<8x128xf32>
      %92 = arith.addf %90, %91 : vector<8x128xf32>
      %93 = math.tanh %92 : vector<8x128xf32>
      %94 = arith.mulf %89, %93 : vector<8x128xf32>
      %c0_48 = arith.constant 0 : index
      %c0_49 = arith.constant 0 : index
      %95 = vector.load %arg15[%c0_48, %c0_49] : memref<8x128xf32, #tpu.memory_space<vmem>>, vector<8x128xf32>
      tpu.vector_store %arg15[%c0_48, %c0_49], %94 {strides = array<i32>} : memref<8x128xf32, #tpu.memory_space<vmem>>, vector<8x128xf32>,
      %c0_50 = arith.constant 0 : index
      %c0_51 = arith.constant 0 : index
      %96 = vector.load %arg16[%c0_50, %c0_51] : memref<8x128xf32, #tpu.memory_space<vmem>>, vector<8x128xf32>
      tpu.vector_store %arg16[%c0_50, %c0_51], %92 {strides = array<i32>} : memref<8x128xf32, #tpu.memory_space<vmem>>, vector<8x128xf32>,
      %97 = arith.index_cast %24 : i32 to index
      %c0_52 = arith.constant 0 : index
      %c0_53 = arith.constant 0 : index
      %98 = vector.load %arg13[%97, %c0_52, %c0_53] : memref<7x8x128xf32, #tpu.memory_space<vmem>>, vector<1x8x128xf32>
      %99 = vector.shape_cast %98 : vector<1x8x128xf32> to vector<8x128xf32>
      %100 = vector.shape_cast %94 : vector<8x128xf32> to vector<1x8x128xf32>
      tpu.vector_store %arg13[%97, %c0_52, %c0_53], %100 {strides = array<i32>} : memref<7x8x128xf32, #tpu.memory_space<vmem>>, vector<1x8x128xf32>,
      %101 = arith.index_cast %24 : i32 to index
      %c0_54 = arith.constant 0 : index
      %c0_55 = arith.constant 0 : index
      %102 = vector.load %arg3[%101, %c0_54, %c0_55] : memref<7x8x1xf32, #tpu.memory_space<vmem>>, vector<1x8x1xf32>
      %103 = vector.shape_cast %102 : vector<1x8x1xf32> to vector<8x1xf32>
      %104 = vector.broadcast %103 : vector<8x1xf32> to vector<8x16xf32>
      %105 = arith.mulf %59, %104 : vector<8x16xf32>
      %106 = arith.index_cast %24 : i32 to index
      %c0_56 = arith.constant 0 : index
      %c0_57 = arith.constant 0 : index
      %107 = vector.load %arg14[%106, %c0_56, %c0_57] : memref<7x8x16xf32, #tpu.memory_space<vmem>>, vector<1x8x16xf32>
      %108 = vector.shape_cast %107 : vector<1x8x16xf32> to vector<8x16xf32>
      %109 = vector.shape_cast %105 : vector<8x16xf32> to vector<1x8x16xf32>
      tpu.vector_store %arg14[%106, %c0_56, %c0_57], %109 {strides = array<i32>} : memref<7x8x16xf32, #tpu.memory_space<vmem>>, vector<1x8x16xf32>,
    }
    %c7_i32_19 = arith.constant 7 : i32
    return
  }
  func.func @transform_0(%arg0: i32) -> (i32, i32, i32) {
    %c0_i32 = arith.constant 0 : i32
    %c0_i32_0 = arith.constant 0 : i32
    %c0_i32_1 = arith.constant 0 : i32
    return %arg0, %c0_i32, %c0_i32_0 : i32, i32, i32
  }
  func.func @transform_1(%arg0: i32) -> (i32, i32, i32) {
    %c0_i32 = arith.constant 0 : i32
    %c0_i32_0 = arith.constant 0 : i32
    %c0_i32_1 = arith.constant 0 : i32
    return %c0_i32, %arg0, %c0_i32_0 : i32, i32, i32
  }
  func.func @transform_2(%arg0: i32) -> (i32, i32, i32) {
    %c0_i32 = arith.constant 0 : i32
    %c0_i32_0 = arith.constant 0 : i32
    %c0_i32_1 = arith.constant 0 : i32
    return %c0_i32, %arg0, %c0_i32_0 : i32, i32, i32
  }
  func.func @transform_3(%arg0: i32) -> (i32, i32) {
    %c0_i32 = arith.constant 0 : i32
    %c0_i32_0 = arith.constant 0 : i32
    %c0_i32_1 = arith.constant 0 : i32
    return %c0_i32, %c0_i32_0 : i32, i32
  }
  func.func @transform_4(%arg0: i32) -> (i32, i32) {
    %c0_i32 = arith.constant 0 : i32
    %c0_i32_0 = arith.constant 0 : i32
    %c0_i32_1 = arith.constant 0 : i32
    return %c0_i32, %c0_i32_0 : i32, i32
  }
  func.func @transform_5(%arg0: i32) -> (i32, i32) {
    %c0_i32 = arith.constant 0 : i32
    %c0_i32_0 = arith.constant 0 : i32
    %c0_i32_1 = arith.constant 0 : i32
    return %c0_i32, %c0_i32_0 : i32, i32
  }
  func.func @transform_6(%arg0: i32) -> (i32, i32) {
    %c0_i32 = arith.constant 0 : i32
    %c0_i32_0 = arith.constant 0 : i32
    %c0_i32_1 = arith.constant 0 : i32
    return %c0_i32, %c0_i32_0 : i32, i32
  }
  func.func @transform_7(%arg0: i32) -> (i32, i32) {
    %c0_i32 = arith.constant 0 : i32
    %c0_i32_0 = arith.constant 0 : i32
    %c0_i32_1 = arith.constant 0 : i32
    return %c0_i32, %c0_i32_0 : i32, i32
  }
  func.func @transform_8(%arg0: i32) -> (i32, i32) {
    %c0_i32 = arith.constant 0 : i32
    %c0_i32_0 = arith.constant 0 : i32
    %c0_i32_1 = arith.constant 0 : i32
    return %c0_i32, %c0_i32_0 : i32, i32
  }
  func.func @transform_9(%arg0: i32) -> (i32, i32) {
    %c0_i32 = arith.constant 0 : i32
    %c0_i32_0 = arith.constant 0 : i32
    %c0_i32_1 = arith.constant 0 : i32
    return %c0_i32, %c0_i32_0 : i32, i32
  }
  func.func @transform_10(%arg0: i32) -> (i32, i32) {
    %c0_i32 = arith.constant 0 : i32
    %c0_i32_0 = arith.constant 0 : i32
    %c0_i32_1 = arith.constant 0 : i32
    return %c0_i32, %c0_i32_0 : i32, i32
  }
  func.func @transform_11(%arg0: i32) -> (i32, i32) {
    %c0_i32 = arith.constant 0 : i32
    %c0_i32_0 = arith.constant 0 : i32
    %c0_i32_1 = arith.constant 0 : i32
    return %c0_i32, %c0_i32_0 : i32, i32
  }
  func.func @transform_12(%arg0: i32) -> (i32, i32, i32) {
    %c0_i32 = arith.constant 0 : i32
    %c0_i32_0 = arith.constant 0 : i32
    %c0_i32_1 = arith.constant 0 : i32
    return %c0_i32, %arg0, %c0_i32_0 : i32, i32, i32
  }
  func.func @transform_13(%arg0: i32) -> (i32, i32, i32) {
    %c0_i32 = arith.constant 0 : i32
    %c0_i32_0 = arith.constant 0 : i32
    %c0_i32_1 = arith.constant 0 : i32
    return %c0_i32, %arg0, %c0_i32_0 : i32, i32, i32
  }
}

</mosaic_0001>

<bundles_post_ra>
// kernel: tpu_custom_call.1
= control target key start
LH: loop header
LB: loop body
LE: loop exit
PB: predicated region body
PF: predicated region fallthrough
CT: control target
= control target key end

     0   :  { %19 = vsyncpa [#allocation5], 0  ;;  %s4581_s0 = inlined_call_operand.hbm [shape: f32[8,16,128], index: 0, kind: input, shape index: {}]   ;;  %s4582_s1 = inlined_call_operand.vmem [shape: f32[7,8,128], index: 1, kind: input, shape index: {}]   ;;  %s4583_s2 = inlined_call_operand.vmem [shape: f32[7,8,1], index: 2, kind: input, shape index: {}]   ;;  %s4584_s3 = inlined_call_operand.hbm [shape: f32[128,128], index: 3, kind: input, shape index: {}]   ;;  %s4585_s4 = inlined_call_operand.vmem [shape: f32[1,128], index: 4, kind: input, shape index: {}]   ;;  %s4586_s5 = inlined_call_operand.hbm [shape: f32[128,256], index: 5, kind: input, shape index: {}]   ;;  %s4587_s6 = inlined_call_operand.vmem [shape: f32[1,256], index: 6, kind: input, shape index: {}]   ;;  %s4588_s7 = inlined_call_operand.hbm [shape: f32[128,768], index: 7, kind: input, shape index: {}]   ;;  %s4589_s8 = inlined_call_operand.vmem [shape: f32[1,768], index: 8, kind: input, shape index: {}]   ;;  %s4590_s9 = inlined_call_operand.hbm [shape: f32[128,512], index: 9, kind: input, shape index: {}]   ;;  %s4591_s10 = inlined_call_operand.hbm [shape: f32[128,512], index: 10, kind: input, shape index: {}]   ;;  %s4592_s11 = inlined_call_operand.vmem [shape: f32[1,128], index: 11, kind: input, shape index: {}]   ;;  %s4593_s12 = inlined_call_operand.hbm [shape: f32[7,8,128], index: 12, kind: output, shape index: {0}]   ;;  %s4594_s13 = inlined_call_operand.hbm [shape: f32[7,8,16], index: 13, kind: output, shape index: {1}]  }
   0x1   :  { %20 = vsyncpa [#allocation8], 0 }
   0x2   :  { %21 = vsyncpa [#allocation11], 0 }
   0x3   :  { %22 = vsyncpa [#allocation14], 0 }
   0x4   :  { %23 = vsyncpa [#allocation6], 0 }
   0x5   :  { %24 = vsyncpa [#allocation17], 0  ;;  %s3702_s25 = smov [#allocation7]   ;;  %s3703_s27 = smov [#allocation10]  }
   0x6   :  { %s46_s26 = sshll.u32 %s3702_s25, 4  ;;  %s74_s28 = sshll.u32 %s3703_s27, 4  ;;  %s47_s26 = int_to_ptr.vmem [resolvable:$true] %s46_s26  ;;  %s3794_s28 = int_to_ptr.vmem [resolvable:$true] %s74_s28 }
   0x7   :  { %s3506_s14 = scalar_lea.hbm %s4584_s3, 2048 }
   0x8   :  { %p3507_p0 = scmp.ne.s32.totalorder %s4584_s3, %s3506_s14  ;;  %p3510_p1 = scmp.lt.u32.totalorder %s3506_s14, %s4584_s3 }
   0xa   :  { %p3512_p2 = pnand %p3510_p1, %p3507_p0 }
   0xc   :  { %3515 = shalt.err (!%p3512_p2)
}
   0xd   :  { %s3516_s19 = scalar_lea.vmem %s47_s26, 2048  ;;  %p3521_p4 = scmp.lt.s32.totalorder %s47_s26, %s47_s26 }
   0xe   :  { %p3517_p3 = scmp.ne.s32.totalorder %s47_s26, %s3516_s19  ;;  %p3522_p5 = scmp.lt.s32.totalorder %s3516_s19, %s3516_s19 }
  0x10   :  { %p3523_p6 = por %p3522_p5, %p3521_p4 }
  0x12   :  { %p3524_p7 = pnand %p3523_p6, %p3517_p3 }
  0x14   :  { %3527 = shalt.err (!%p3524_p7)
}
  0x15   :  { %s3704_s20 = smov 128   ;;  %s3705_s21 = smov 8  }
  0x16   :  { %52 = dma.hbm_to_vmem [thread:$0]  %s4584_s3, 2048, %s47_s26, [#allocation8], %s3704_s20, %s3704_s20, %s3705_s21  }
  0x17   :  { %s3528_s27 = scalar_lea.hbm %s4588_s7, 12288 }
  0x18   :  { %p3529_p8 = scmp.ne.s32.totalorder %s4588_s7, %s3528_s27  ;;  %p3532_p9 = scmp.lt.u32.totalorder %s3528_s27, %s4588_s7 }
  0x1a   :  { %p3534_p10 = pnand %p3532_p9, %p3529_p8 }
  0x1c   :  { %3537 = shalt.err (!%p3534_p10)
}
  0x1d   :  { %s3538_s16 = scalar_lea.vmem %s3794_s28, 12288  ;;  %p3543_p12 = scmp.lt.s32.totalorder %s3794_s28, %s3794_s28 }
  0x1e   :  { %p3539_p11 = scmp.ne.s32.totalorder %s3794_s28, %s3538_s16  ;;  %p3544_p13 = scmp.lt.s32.totalorder %s3538_s16, %s3538_s16 }
  0x20   :  { %p3545_p0 = por %p3544_p13, %p3543_p12 }
  0x22   :  { %p3546_p1 = pnand %p3545_p0, %p3539_p11 }
  0x24   :  { %3549 = shalt.err (!%p3546_p1)
}
  0x25   :  { %s3706_s3 = smov 768   ;;  %s3707_s26 = smov 48  }
  0x26   :  { %80 = dma.hbm_to_vmem [thread:$0]  %s4588_s7, 12288, %s3794_s28, [#allocation11], %s3706_s3, %s3706_s3, %s3707_s26  }
  0x27   :  { %s3708_s19 = smov [#allocation4]   ;;  %s3709_s23 = smov [#allocation9]  }
  0x28   :  { %s30_s22 = sshll.u32 %s3708_s19, 4  ;;  %s60_s24 = sshll.u32 %s3709_s23, 4  ;;  %s31_s22 = int_to_ptr.vmem [resolvable:$true] %s30_s22  ;;  %s3828_s24 = int_to_ptr.vmem [resolvable:$true] %s60_s24 }
  0x29   :  { %s3550_s29 = scalar_lea.hbm %s4581_s0, 2048 }
  0x2a   :  { %p3551_p2 = scmp.ne.s32.totalorder %s4581_s0, %s3550_s29  ;;  %p3554_p3 = scmp.lt.u32.totalorder %s3550_s29, %s4581_s0 }
  0x2c   :  { %p3556_p4 = pnand %p3554_p3, %p3551_p2 }
  0x2e   :  { %3559 = shalt.err (!%p3556_p4)
}
  0x2f   :  { %s3560_s7 = scalar_lea.vmem %s31_s22, 2048  ;;  %p3565_p6 = scmp.lt.s32.totalorder %s31_s22, %s31_s22 }
  0x30   :  { %p3561_p5 = scmp.ne.s32.totalorder %s31_s22, %s3560_s7  ;;  %p3566_p7 = scmp.lt.s32.totalorder %s3560_s7, %s3560_s7 }
  0x32   :  { %p3567_p8 = por %p3566_p7, %p3565_p6 }
  0x34   :  { %p3568_p9 = pnand %p3567_p8, %p3561_p5 }
  0x36   :  { %3571 = shalt.err (!%p3568_p9)
}
  0x37   :  { %36 = dma.hbm_to_vmem [thread:$0]  %s4581_s0, 2048, %s31_s22, [#allocation5], %s3704_s20, %s3704_s20, %s3705_s21  }
  0x38   :  { %s3572_s18 = scalar_lea.hbm %s4586_s5, 4096 }
  0x39   :  { %p3573_p10 = scmp.ne.s32.totalorder %s4586_s5, %s3572_s18  ;;  %p3576_p11 = scmp.lt.u32.totalorder %s3572_s18, %s4586_s5 }
  0x3b   :  { %p3578_p12 = pnand %p3576_p11, %p3573_p10 }
  0x3d   :  { %3581 = shalt.err (!%p3578_p12)
}
  0x3e   :  { %s3582_s29 = scalar_lea.vmem %s3828_s24, 4096  ;;  %p3587_p0 = scmp.lt.s32.totalorder %s3828_s24, %s3828_s24 }
  0x3f   :  { %p3583_p13 = scmp.ne.s32.totalorder %s3828_s24, %s3582_s29  ;;  %p3588_p1 = scmp.lt.s32.totalorder %s3582_s29, %s3582_s29 }
  0x41   :  { %p3589_p2 = por %p3588_p1, %p3587_p0 }
  0x43   :  { %p3590_p3 = pnand %p3589_p2, %p3583_p13 }
  0x45   :  { %3593 = shalt.err (!%p3590_p3)
}
  0x46   :  { %s3710_s0 = smov 256   ;;  %s3711_s22 = smov 16  }
  0x47   :  { %66 = dma.hbm_to_vmem [thread:$0]  %s4586_s5, 4096, %s3828_s24, [#allocation8], %s3710_s0, %s3710_s0, %s3711_s22  }
  0x48   :  { %s3712_s15 = smov [#allocation12]   ;;  %s3594_s3 = scalar_lea.hbm %s4590_s9, 8192 }
  0x49   :  { %s88_s16 = sshll.u32 %s3712_s15, 4  ;;  %p3595_p4 = scmp.ne.s32.totalorder %s4590_s9, %s3594_s3  ;;  %s89_s16 = int_to_ptr.vmem [resolvable:$true] %s88_s16 }
  0x4a   :  { %p3598_p5 = scmp.lt.u32.totalorder %s3594_s3, %s4590_s9 }
  0x4c   :  { %p3600_p6 = pnand %p3598_p5, %p3595_p4 }
  0x4e   :  { %3603 = shalt.err (!%p3600_p6)
}
  0x4f   :  { %s3604_s23 = scalar_lea.vmem %s89_s16, 8192  ;;  %p3609_p8 = scmp.lt.s32.totalorder %s89_s16, %s89_s16 }
  0x50   :  { %p3605_p7 = scmp.ne.s32.totalorder %s89_s16, %s3604_s23  ;;  %p3610_p9 = scmp.lt.s32.totalorder %s3604_s23, %s3604_s23 }
  0x52   :  { %p3611_p10 = por %p3610_p9, %p3609_p8 }
  0x54   :  { %p3612_p11 = pnand %p3611_p10, %p3605_p7 }
  0x56   :  { %3615 = shalt.err (!%p3612_p11)
}
  0x57   :  { %s3713_s5 = smov 512   ;;  %s3714_s24 = smov 32  }
  0x58   :  { %94 = dma.hbm_to_vmem [thread:$0]  %s4590_s9, 8192, %s89_s16, [#allocation11], %s3713_s5, %s3713_s5, %s3714_s24  }
  0x59   :  { %s3715_s29 = smov [#allocation13]   ;;  %s3616_s14 = scalar_lea.hbm %s4591_s10, 8192 }
  0x5a   :  { %s100_s0 = sshll.u32 %s3715_s29, 4  ;;  %p3617_p12 = scmp.ne.s32.totalorder %s4591_s10, %s3616_s14  ;;  %s101_s0 = int_to_ptr.vmem [resolvable:$true] %s100_s0 }
  0x5b   :  { %p3620_p13 = scmp.lt.u32.totalorder %s3616_s14, %s4591_s10 }
  0x5d   :  { %p3622_p0 = pnand %p3620_p13, %p3617_p12 }
  0x5f   :  { %3625 = shalt.err (!%p3622_p0)
}
  0x60   :  { %s3626_s26 = scalar_lea.vmem %s101_s0, 8192  ;;  %p3631_p2 = scmp.lt.s32.totalorder %s101_s0, %s101_s0 }
  0x61   :  { %p3627_p1 = scmp.ne.s32.totalorder %s101_s0, %s3626_s26  ;;  %p3632_p3 = scmp.lt.s32.totalorder %s3626_s26, %s3626_s26 }
  0x63   :  { %p3633_p4 = por %p3632_p3, %p3631_p2 }
  0x65   :  { %p3634_p5 = pnand %p3633_p4, %p3627_p1 }
  0x67   :  { %3637 = shalt.err (!%p3634_p5)
}
  0x68   :  { %106 = dma.hbm_to_vmem [thread:$0]  %s4591_s10, 8192, %s101_s0, [#allocation14], %s3713_s5, %s3713_s5, %s3714_s24  }
  0x69   :  { %3686 = dma.done.wait [#allocation5], 2048  }
  0x6a   :  { %3687 = vsyncadd [#allocation5], 4294965248 }
  0x6b   :  { %3688 = dma.done.wait [#allocation8], 6144  }
  0x6c   :  { %3689 = vsyncadd [#allocation8], 4294961152 }
  0x6d   :  { %3690 = dma.done.wait [#allocation11], 20480  }
  0x6e   :  { %3691 = vsyncadd [#allocation11], 4294946816 }
  0x6f   :  { %3692 = dma.done.wait [#allocation14], 8192  }
  0x70   :  { %3693 = vsyncadd [#allocation14], 4294959104  ;;  %v3716_v0 = vmov 0.0   ;;  %v3889_v1 = vld [vmem:[%s4592_s11] ss:$0 sm:$0xff]  ;;  %v143_v2 = vld [vmem:[#allocation7] sm:$0xff] }
  0x71   :  { %507 = vmatprep.mubr.f32.mxu1 %v3716_v0  ;;  %4604 = vst [vmem:[#allocation24_spill] sm:$0xff] %v3889_v1  ;;  %v144_v3 = vld [vmem:[#allocation7 + $0x8] sm:$0xff]  ;;  %v145_v5 = vld [vmem:[#allocation7 + $0x10] sm:$0xff]  ;;  %v146_v6 = vld [vmem:[#allocation7 + $0x18] sm:$0xff]  ;;  %vm428_vm0 = vcmask 1041409   ;;  %vm430_vm1 = vcmask 1042434  }
  0x72   :  { %v3080_v4 = vpack.c.bf16 %v144_v3, %v143_v2  ;;  %v3084_v7 = vpack.c.bf16 %v146_v6, %v145_v5  ;;  %v147_v8 = vld [vmem:[#allocation7 + $0x20] sm:$0xff]  ;;  %v148_v9 = vld [vmem:[#allocation7 + $0x28] sm:$0xff]  ;;  %v379_v12 = vld [vmem:[#allocation9 + $0x18] sm:$0xff]  ;;  %vm432_vm2 = vcmask 1043459   ;;  %vm434_vm3 = vcmask 1044484  }
  0x73   :  { %v3088_v10 = vpack.c.bf16 %v148_v9, %v147_v8  ;;  %v377_v11 = vld [vmem:[#allocation9 + $0x8] sm:$0xff]  ;;  %v376_v13 = vld [vmem:[#allocation9] sm:$0xff]  ;;  %v149_v14 = vld [vmem:[#allocation7 + $0x30] sm:$0xff]  ;;  %vm436_vm4 = vcmask 1045509   ;;  %vm438_vm5 = vcmask 1046534   ;;  %vm440_vm6 = vcmask 1047559  }
  0x74   :  { %3081 = vmatprep.subr.bf16.mxu0 %v3080_v4  ;;  %v150_v15 = vld [vmem:[#allocation7 + $0x38] sm:$0xff]  ;;  %v3112_v16 = vpack.c.bf16 %v379_v12, %v377_v11  ;;  %v378_v17 = vld [vmem:[#allocation9 + $0x10] sm:$0xff]  ;;  %v151_v18 = vld [vmem:[#allocation7 + $0x40] sm:$0xff] }
  0x75   :  { %3083 = vmatpush3.bf16.msra.mxu0 %v3080_v4  ;;  %v152_v19 = vld [vmem:[#allocation7 + $0x48] sm:$0xff]  ;;  %v3114_v20 = vpack.c.bf16 %v378_v17, %v376_v13  ;;  %v383_v22 = vld [vmem:[#allocation9 + $0x38] sm:$0xff]  ;;  %v380_v23 = vld [vmem:[#allocation9 + $0x20] sm:$0xff]  ;;  %v3092_v28 = vpack.c.bf16 %v150_v15, %v149_v14 }
  0x76   :  { %3085 = vmatprep.subr.bf16.mxu0 %v3084_v7  ;;  %v381_v21 = vld [vmem:[#allocation9 + $0x28] sm:$0xff]  ;;  %3113 = vmatprep.subr.bf16.mxu1 %v3112_v16  ;;  %v382_v25 = vld [vmem:[#allocation9 + $0x30] sm:$0xff]  ;;  %v3891_v26 = vld [vmem:[#allocation4] sm:$0xff]  ;;  %v3096_v45 = vpack.c.bf16 %v152_v19, %v151_v18 }
  0x77   :  { %v3116_v24 = vpack.c.bf16 %v383_v22, %v381_v21  ;;  %v3893_v27 = vld [vmem:[#allocation4 + $0x8] sm:$0xff]  ;;  %3115 = vmatpush1.bf16.msra.mxu1 %v3114_v20  ;;  %v3118_v29 = vpack.c.bf16 %v382_v25, %v380_v23  ;;  %v387_v32 = vld [vmem:[#allocation9 + $0x58] sm:$0xff]  ;;  %v384_v33 = vld [vmem:[#allocation9 + $0x40] sm:$0xff]  ;;  %3000 = vmatprep.mubr.f32.mxu0 %v3891_v26 }
  0x78   :  { %v311_v30 = vadd.f32 %v3893_v27, %v3891_v26  ;;  %v385_v31 = vld [vmem:[#allocation9 + $0x48] sm:$0xff]  ;;  %v386_v35 = vld [vmem:[#allocation9 + $0x50] sm:$0xff]  ;;  %v3900_v37 = vld [vmem:[#allocation4 + $0x18] sm:$0xff] }
  0x79   :  { %3087 = vmatpush3.bf16.msra.mxu0 %v3084_v7  ;;  %3117 = vmatprep.subr.bf16.mxu1 %v3116_v24  ;;  %v3120_v34 = vpack.c.bf16 %v387_v32, %v385_v31  ;;  %v3898_v36 = vld [vmem:[#allocation4 + $0x10] sm:$0xff]  ;;  %v154_v39 = vld [vmem:[#allocation7 + $0x58] sm:$0xff]  ;;  %v155_v40 = vld [vmem:[#allocation7 + $0x60] sm:$0xff]  ;;  %v3122_v52 = vpack.c.bf16 %v386_v35, %v384_v33 }
  0x7a   :  { %3089 = vmatprep.subr.bf16.mxu0 %v3088_v10  ;;  %v153_v38 = vld [vmem:[#allocation7 + $0x50] sm:$0xff]  ;;  %v312_v41 = vrot.slane %v311_v30, 4  ;;  %v318_v42 = vadd.f32 %v3900_v37, %v3898_v36  ;;  %v389_v43 = vld [vmem:[#allocation9 + $0x68] sm:$0xff]  ;;  %v391_v44 = vld [vmem:[#allocation9 + $0x78] sm:$0xff] }
  0x7b   :  { %v156_v46 = vld [vmem:[#allocation7 + $0x68] sm:$0xff]  ;;  %v3904_v47 = vld [vmem:[#allocation4 + $0x20] sm:$0xff]  ;;  %v157_v49 = vld [vmem:[#allocation7 + $0x70] sm:$0xff]  ;;  %3119 = vmatpush1.bf16.msra.mxu1 %v3118_v29  ;;  %v3124_v56 = vpack.c.bf16 %v391_v44, %v389_v43  ;;  %v3100_v3 = vpack.c.bf16 %v154_v39, %v153_v38 }
  0x7c   :  { %v3906_v48 = vld [vmem:[#allocation4 + $0x28] sm:$0xff]  ;;  %v158_v50 = vld [vmem:[#allocation7 + $0x78] sm:$0xff]  ;;  %v313_v51 = vadd.f32 %v312_v41, %v311_v30  ;;  %v319_v53 = vrot.slane %v318_v42, 4  ;;  %v388_v54 = vld [vmem:[#allocation9 + $0x60] sm:$0xff]  ;;  %3121 = vmatprep.subr.bf16.mxu1 %v3120_v34  ;;  %v3916_v4 = vpack.c.bf16 %v156_v46, %v155_v40 }
  0x7d   :  { %3091 = vmatpush3.bf16.msra.mxu0 %v3088_v10  ;;  %v325_v55 = vadd.f32 %v3906_v48, %v3904_v47  ;;  %v390_v57 = vld [vmem:[#allocation9 + $0x70] sm:$0xff]  ;;  %v3912_v59 = vld [vmem:[#allocation4 + $0x38] sm:$0xff]  ;;  %v393_v63 = vld [vmem:[#allocation9 + $0x88] sm:$0xff]  ;;  %v3926_v16 = vpack.c.bf16 %v158_v50, %v157_v49 }
  0x7e   :  { %3093 = vmatprep.subr.bf16.mxu0 %v3092_v28  ;;  %v3910_v58 = vld [vmem:[#allocation4 + $0x30] sm:$0xff]  ;;  %v314_v60 = vrot.slane %v313_v51, 2  ;;  %v320_v61 = vadd.f32 %v319_v53, %v318_v42  ;;  %v395_v0 = vld [vmem:[#allocation9 + $0x98] sm:$0xff]  ;;  %v3914_v2 = vld [vmem:[#allocation9 + $0x80] sm:$0xff]  ;;  %v3126_v11 = vpack.c.bf16 %v390_v57, %v388_v54 }
  0x7f   :  { %v326_v62 = vrot.slane %v325_v55, 4  ;;  %v394_v5 = vld [vmem:[#allocation9 + $0x90] sm:$0xff]  ;;  %v332_v6 = vadd.f32 %v3912_v59, %v3910_v58  ;;  %v3920_v7 = vld [vmem:[#allocation4 + $0x40] sm:$0xff]  ;;  %v3922_v8 = vld [vmem:[#allocation4 + $0x48] sm:$0xff]  ;;  %3123 = vmatpush1.bf16.msra.mxu1 %v3122_v52  ;;  %v3128_v17 = vpack.c.bf16 %v395_v0, %v393_v63 }
  0x80   :  { %v315_v9 = vadd.f32 %v314_v60, %v313_v51  ;;  %v321_v10 = vrot.slane %v320_v61, 2  ;;  %v397_v13 = vld [vmem:[#allocation9 + $0xa8] sm:$0xff]  ;;  %v399_v14 = vld [vmem:[#allocation9 + $0xb8] sm:$0xff]  ;;  %v3924_v15 = vld [vmem:[#allocation9 + $0xa0] sm:$0xff]  ;;  %3125 = vmatprep.subr.bf16.mxu1 %v3124_v56  ;;  %v339_v20 = vadd.f32 %v3922_v8, %v3920_v7 }
  0x81   :  { %3095 = vmatpush3.bf16.msra.mxu0 %v3092_v28  ;;  %v327_v12 = vadd.f32 %v326_v62, %v325_v55  ;;  %v333_v18 = vrot.slane %v332_v6, 4  ;;  %v3928_v19 = vld [vmem:[#allocation9 + $0xb0] sm:$0xff]  ;;  %v3934_v22 = vld [vmem:[#allocation4 + $0x58] sm:$0xff]  ;;  %v3130_v28 = vpack.c.bf16 %v394_v5, %v3914_v2  ;;  %v3132_v30 = vpack.c.bf16 %v399_v14, %v397_v13  ;;  %v3939_v33 = vld [vmem:[#allocation4 + $0x60] sm:$0xff] }
  0x82   :  { %3097 = vmatprep.subr.bf16.mxu0 %v3096_v45  ;;  %v3932_v21 = vld [vmem:[#allocation4 + $0x50] sm:$0xff]  ;;  %v316_v23 = vrot.slane %v315_v9, 1  ;;  %v322_v24 = vadd.f32 %v321_v10, %v320_v61  ;;  %v340_v31 = vrot.slane %v339_v20, 4  ;;  %v3941_v34 = vld [vmem:[#allocation4 + $0x68] sm:$0xff]  ;;  %v3134_v40 = vpack.c.bf16 %v3928_v19, %v3924_v15  ;;  %v3947_v42 = vld [vmem:[#allocation4 + $0x78] sm:$0xff] }
  0x83   :  { %v328_v25 = vrot.slane %v327_v12, 2  ;;  %v334_v29 = vadd.f32 %v333_v18, %v332_v6  ;;  %v346_v32 = vadd.f32 %v3934_v22, %v3932_v21  ;;  %4605 = vst [vmem:[#allocation25_spill] sm:$0xff] %v3941_v34  ;;  %3127 = vmatpush1.bf16.msra.mxu1 %v3126_v11  ;;  %v3945_v41 = vld [vmem:[#allocation4 + $0x70] sm:$0xff]  ;;  %4607 = vst [vmem:[#allocation27_spill] sm:$0xff] %v3947_v42  ;;  %v403_v46 = vld [vmem:[#allocation9 + $0xd8] sm:$0xff] }
  0x84   :  { %v317_v35 = vadd.f32 %v316_v23, %v315_v9  ;;  %v323_v38 = vrot.slane %v322_v24, 1  ;;  %4606 = vst [vmem:[#allocation26_spill] sm:$0xff] %v3945_v41  ;;  %3129 = vmatprep.subr.bf16.mxu1 %v3128_v17  ;;  %v341_v44 = vadd.f32 %v340_v31, %v339_v20  ;;  %v353_v50 = vadd.f32 %v3941_v34, %v3939_v33  ;;  %v400_v0 = vld [vmem:[#allocation9 + $0xc0] sm:$0xff]  ;;  %v402_v9 = vld [vmem:[#allocation9 + $0xd0] sm:$0xff]  ;;  %v405_v11 = vld [vmem:[#allocation9 + $0xe8] sm:$0xff] }
  0x85   :  { %3099 = vmatpush3.bf16.msra.mxu0 %v3096_v45  ;;  %v329_v39 = vadd.f32 %v328_v25, %v327_v12  ;;  %v335_v43 = vrot.slane %v334_v29, 2  ;;  %v401_v45 = vld [vmem:[#allocation9 + $0xc8] sm:$0xff]  ;;  %v347_v49 = vrot.slane %v346_v32, 4  ;;  %v360_v54 = vadd.f32 %v3947_v42, %v3945_v41  ;;  %v407_v12 = vld [vmem:[#allocation9 + $0xf8] sm:$0xff] }
  0x86   :  { %3101 = vmatprep.subr.bf16.mxu0 %v3100_v3  ;;  %v368_v51 = vmul.f32 0.0625, %v317_v35  ;;  %v324_v52 = vadd.f32 %v323_v38, %v322_v24  ;;  %v342_v56 = vrot.slane %v341_v44, 2  ;;  %v354_v60 = vrot.slane %v353_v50, 4  ;;  %v406_v35 = vld [vmem:[#allocation9 + $0xf0] sm:$0xff] }
  0x87   :  { %v330_v53 = vrot.slane %v329_v39, 1  ;;  %v336_v55 = vadd.f32 %v335_v43, %v334_v29  ;;  %v348_v57 = vadd.f32 %v347_v49, %v346_v32  ;;  %3131 = vmatpush1.bf16.msra.mxu1 %v3130_v28  ;;  %v3136_v63 = vpack.c.bf16 %v403_v46, %v401_v45  ;;  %v404_v32 = vld [vmem:[#allocation9 + $0xe0] sm:$0xff] }
  0x88   :  { %v369_v61 = vmul.f32 0.0625, %v324_v52  ;;  %v361_v2 = vrot.slane %v360_v54, 4  ;;  %3133 = vmatprep.subr.bf16.mxu1 %v3132_v30  ;;  %v343_v6 = vadd.f32 %v342_v56, %v341_v44  ;;  %v3138_v23 = vpack.c.bf16 %v402_v9, %v400_v0 }
  0x89   :  { %3103 = vmatpush3.bf16.msra.mxu0 %v3100_v3  ;;  %v331_v62 = vadd.f32 %v330_v53, %v329_v39  ;;  %v337_v5 = vrot.slane %v336_v55, 1  ;;  %v349_v10 = vrot.slane %v348_v57, 2  ;;  %v355_v3 = vadd.f32 %v354_v60, %v353_v50 }
  0x8a   :  { %3105 = vmatprep.subr.bf16.mxu0 %v3916_v4  ;;  %v429_v13 = vsel %vm428_vm0, %v369_v61, %v368_v51  ;;  %v362_v15 = vadd.f32 %v361_v2, %v360_v54  ;;  %v344_v18 = vrot.slane %v343_v6, 1  ;;  %v3140_v24 = vpack.c.bf16 %v407_v12, %v405_v11  ;;  %v2897_v61 = vld [vmem:[%s4585_s4] ss:$0 sm:$0xff]  ;;  %s4028_s4 = smov 0  }
  0x8b   :  { %v370_v14 = vmul.f32 0.0625, %v331_v62  ;;  %v338_v17 = vadd.f32 %v337_v5, %v336_v55  ;;  %v350_v19 = vadd.f32 %v349_v10, %v348_v57  ;;  %v356_v20 = vrot.slane %v355_v3, 2  ;;  %3135 = vmatpush1.bf16.msra.mxu1 %v3134_v40 }
  0x8c   :  { %v363_v25 = vrot.slane %v362_v15, 2  ;;  %v345_v30 = vadd.f32 %v344_v18, %v343_v6  ;;  %3137 = vmatprep.subr.bf16.mxu1 %v3136_v63  ;;  %v3142_v45 = vpack.c.bf16 %v406_v35, %v404_v32  ;;  %v4595_v57 = vlaneseq  ;;  %v408_v63 = vld [vmem:[%s4587_s6] sm:$0x3] }
  0x8d   :  { %3107 = vmatpush3.bf16.msra.mxu0 %v3916_v4  ;;  %v431_v28 = vsel %vm430_vm1, %v370_v14, %v429_v13  ;;  %v371_v29 = vmul.f32 0.0625, %v338_v17  ;;  %v351_v31 = vrot.slane %v350_v19, 1  ;;  %v357_v38 = vadd.f32 %v356_v20, %v355_v3 }
  0x8e   :  { %3109 = vmatprep.subr.bf16.mxu0 %v3926_v16  ;;  %v364_v4 = vadd.f32 %v363_v25, %v362_v15  ;;  %v372_v39 = vmul.f32 0.0625, %v345_v30  ;;  %v3980_v60 = vshrl.u32 %v4595_v57, 7 }
  0x8f   :  { %v352_v43 = vadd.f32 %v351_v31, %v350_v19  ;;  %v358_v44 = vrot.slane %v357_v38, 1  ;;  %v433_v40 = vsel %vm432_vm2, %v371_v29, %v431_v28  ;;  %3139 = vmatpush1.bf16.msra.mxu1 %v3138_v23 }
  0x90   :  { %v365_v46 = vrot.slane %v364_v4, 1  ;;  %3141 = vmatprep.subr.bf16.mxu1 %v3140_v24  ;;  %v435_v51 = vsel %vm434_vm3, %v372_v39, %v433_v40  ;;  %4608 = vst [vmem:[#allocation28_spill] sm:$0xff] %v3980_v60  ;;  %v3986_v62 = vsub.s32 0, %v3980_v60  ;;  %v3992_v0 = vsub.s32 1, %v3980_v60 }
  0x91   :  { %3111 = vmatpush3.bf16.msra.mxu0 %v3926_v16  ;;  %v373_v49 = vmul.f32 0.0625, %v352_v43  ;;  %v359_v50 = vadd.f32 %v358_v44, %v357_v38 }
  0x92   :  { %v366_v52 = vadd.f32 %v365_v46, %v364_v4  ;;  %v413_v10 = vrot.slane %v408_v63, %v3986_v62  ;;  %v417_v11 = vrot.slane %v408_v63, %v3992_v0 }
  0x93   :  { %v374_v16 = vmul.f32 0.0625, %v359_v50  ;;  %v437_v53 = vsel %vm436_vm4, %v373_v49, %v435_v51  ;;  %3143 = vmatpush1.bf16.msra.mxu1 %v3142_v45 }
  0x94   :  { %3001 = vmatmul.mubr.f32.vlgmr.msra.gmra.mrb[0].mxu0 %v3893_v27  ;;  %v375_v54 = vmul.f32 0.0625, %v366_v52 }
  0x95   :  { %3003 = vmatprep.mubr.f32.mxu0 %v3898_v36  ;;  %v439_v55 = vsel %vm438_vm5, %v374_v16, %v437_v53 }
  0x96   :  { %v441_v56 = vsel %vm440_vm6, %v375_v54, %v439_v55 }
  0x97   :  { %508 = vmatmul.mubr.f32.vlgmr.msra.gmra.mrb[0].mxu1 %v441_v56 }
  0x98   :  { %3004 = vmatmul.mubr.f32.gmra.mrb[2].mxu0 %v3900_v37 }
  0x99   :  { %3006 = vmatprep.mubr.f32.mxu0 %v3904_v47 }
  0x9c   :  { %3007 = vmatmul.mubr.f32.gmra.mrb[4].mxu0 %v3906_v48 }
  0x9d   :  { %3009 = vmatprep.mubr.f32.mxu0 %v3910_v58 }
  0xa0   :  { %3010 = vmatmul.mubr.f32.gmra.mrb[6].mxu0 %v3912_v59 }
  0xa1   :  { %3012 = vmatprep.mubr.f32.mxu0 %v3920_v7 }
  0xa4   :  { %3013 = vmatmul.mubr.f32.gmra.mrb[8].mxu0 %v3922_v8 }
  0xa5   :  { %3015 = vmatprep.mubr.f32.mxu0 %v3932_v21 }
  0xa8   :  { %3016 = vmatmul.mubr.f32.gmra.mrb[10].mxu0 %v3934_v22 }
  0xa9   :  { %3018 = vmatprep.mubr.f32.mxu0 %v3939_v33 }
  0xac   :  { %3019 = vmatmul.mubr.f32.gmra.mrb[12].mxu0 %v3941_v34 }
  0xad   :  { %3021 = vmatprep.mubr.f32.mxu0 %v3945_v41 }
  0xb0   :  { %3022 = vmatmul.mubr.f32.gmra.mrb[14].mxu0 %v3947_v42 }
 0x167   :  { %v3002_v2 = vpop.f32.mrb[0].mxu0 }
 0x168   :  { %v3994_v5 = vadd.f32 %v3002_v2, %v2897_v61  ;;  %v232_v6 = vpop.f32.mrb[1].mxu0 }
 0x169   :  { %v3996_v9 = vadd.f32 %v2897_v61, %v232_v6 }
 0x16a   :  { %4609 = vst [vmem:[#allocation29_spill] sm:$0xff] %v3994_v5  ;;  %v509_v14 = vpop.f32.mrb[0].mxu1 }
 0x16b   :  { %4610 = vst [vmem:[#allocation30_spill] sm:$0xff] %v3996_v9  ;;  %v3005_v12 = vpop.f32.mrb[2].mxu0  ;;  %v510_v17 = vadd.f32 %v509_v14, %v413_v10  ;;  %v511_v18 = vpop.f32.mrb[1].mxu1 }
 0x16c   :  { %v4000_v3 = vadd.f32 %v3005_v12, %v2897_v61  ;;  %v242_v13 = vpop.f32.mrb[3].mxu0  ;;  %v512_v19 = vadd.f32 %v511_v18, %v417_v11 }
 0x16d   :  { %v4002_v15 = vadd.f32 %v2897_v61, %v242_v13  ;;  %514 = vst [vmem:[#allocation2] sm:$0xff] %v510_v17 }
 0x16e   :  { %4611 = vst [vmem:[#allocation31_spill] sm:$0xff] %v4000_v3  ;;  %515 = vst [vmem:[#allocation3] sm:$0xff] %v512_v19 }
 0x16f   :  { %4612 = vst [vmem:[#allocation32_spill] sm:$0xff] %v4002_v15  ;;  %v3008_v20 = vpop.f32.mrb[4].mxu0 }
 0x170   :  { %v4004_v23 = vadd.f32 %v3008_v20, %v2897_v61  ;;  %v252_v24 = vpop.f32.mrb[5].mxu0 }
 0x171   :  { %v4006_v25 = vadd.f32 %v2897_v61, %v252_v24 }
 0x172   :  { %4613 = vst [vmem:[#allocation33_spill] sm:$0xff] %v4004_v23 }
 0x173   :  { %4614 = vst [vmem:[#allocation34_spill] sm:$0xff] %v4006_v25  ;;  %v3011_v28 = vpop.f32.mrb[6].mxu0 }
 0x174   :  { %v4008_v29 = vadd.f32 %v3011_v28, %v2897_v61  ;;  %v262_v30 = vpop.f32.mrb[7].mxu0 }
 0x175   :  { %v4010_v31 = vadd.f32 %v2897_v61, %v262_v30 }
 0x176   :  { %4615 = vst [vmem:[#allocation35_spill] sm:$0xff] %v4008_v29 }
 0x177   :  { %4616 = vst [vmem:[#allocation36_spill] sm:$0xff] %v4010_v31  ;;  %v3014_v32 = vpop.f32.mrb[8].mxu0 }
 0x178   :  { %v4012_v35 = vadd.f32 %v3014_v32, %v2897_v61  ;;  %v272_v38 = vpop.f32.mrb[9].mxu0 }
 0x179   :  { %v4014_v4 = vadd.f32 %v2897_v61, %v272_v38 }
 0x17a   :  { %4617 = vst [vmem:[#allocation37_spill] sm:$0xff] %v4012_v35 }
 0x17b   :  { %4618 = vst [vmem:[#allocation38_spill] sm:$0xff] %v4014_v4  ;;  %v3017_v39 = vpop.f32.mrb[10].mxu0 }
 0x17c   :  { %v4016_v43 = vadd.f32 %v3017_v39, %v2897_v61  ;;  %v282_v44 = vpop.f32.mrb[11].mxu0 }
 0x17d   :  { %v4018_v40 = vadd.f32 %v2897_v61, %v282_v44 }
 0x17e   :  { %4619 = vst [vmem:[#allocation39_spill] sm:$0xff] %v4016_v43 }
 0x17f   :  { %4620 = vst [vmem:[#allocation40_spill] sm:$0xff] %v4018_v40  ;;  %v3020_v45 = vpop.f32.mrb[12].mxu0 }
 0x180   :  { %v4020_v46 = vadd.f32 %v3020_v45, %v2897_v61  ;;  %v292_v49 = vpop.f32.mrb[13].mxu0 }
 0x181   :  { %v4022_v50 = vadd.f32 %v2897_v61, %v292_v49 }
 0x182   :  { %4621 = vst [vmem:[#allocation41_spill] sm:$0xff] %v4020_v46 }
 0x183   :  { %4622 = vst [vmem:[#allocation42_spill] sm:$0xff] %v4022_v50  ;;  %v3023_v51 = vpop.f32.mrb[14].mxu0 }
 0x184   :  { %v4024_v52 = vadd.f32 %v3023_v51, %v2897_v61  ;;  %v302_v16 = vpop.f32.mrb[15].mxu0 }
 0x185   :  { %v4026_v53 = vadd.f32 %v2897_v61, %v302_v16 }
 0x186   :  { %4623 = vst [vmem:[#allocation43_spill] sm:$0xff] %v4024_v52 }
 0x187   :  { %4624 = vst [vmem:[#allocation44_spill] sm:$0xff] %v4026_v53 }
 0x188 LB: > { %v4625_v60 = vld [vmem:[#allocation28_spill] sm:$0xff]  ;;  %v529_v54 = vld [vmem:[#allocation10 + $0x8] sm:$0xff]  ;;  %v535_v55 = vld [vmem:[#allocation10 + $0x38] sm:$0xff]  ;;  %v4596_v11 = vmov 0.0   ;;  %v4644_v57 = vlaneseq  ;;  %vm1078_vm7 = vcmask 130112   ;;  %vm1151_vm8 = vcmask 130048   ;;  %s3700_s4 = sphi %s4028_s4, %s522_s4  }
 0x189   : > { %v4626_v1 = vld [vmem:[#allocation24_spill] sm:$0xff]  ;;  %v528_v56 = vld [vmem:[#allocation10] sm:$0xff]  ;;  %v3144_v63 = vpack.c.bf16 %v535_v55, %v529_v54  ;;  %v541_v6 = vld [vmem:[#allocation10 + $0x68] sm:$0xff]  ;;  %720 = vmatprep.mubr.f32.mxu0 %v4596_v11  ;;  %791 = vmatprep.mubr.f32.mxu1 %v4596_v11  ;;  %s4315_s24 = sshll.u32 %s3700_s4, 3  ;;  %vm3721_vm9 = vmmov 0   ;;  %s522_s4 = sadd.s32 1, %s3700_s4  }
 0x18a   : > { %v534_v2 = vld [vmem:[#allocation10 + $0x30] sm:$0xff]  ;;  %v547_v10 = vld [vmem:[#allocation10 + $0x98] sm:$0xff]  ;;  %v540_v13 = vld [vmem:[#allocation10 + $0x60] sm:$0xff]  ;;  %s2640_s29 = scalar_lea.vmem %s4583_s2, %s4315_s24  ;;  %s526_s30 = scalar_lea.vmem %s4582_s1, %s4315_s24 }
 0x18b   : > { %v3146_v61 = vpack.c.bf16 %v534_v2, %v528_v56  ;;  %v3148_v12 = vpack.c.bf16 %v547_v10, %v541_v6  ;;  %v546_v14 = vld [vmem:[#allocation10 + $0x90] sm:$0xff]  ;;  %v553_v17 = vld [vmem:[#allocation10 + $0xc8] sm:$0xff]  ;;  %3145 = vmatprep.subr.bf16.mxu0 %v3144_v63  ;;  %v559_v18 = vld [vmem:[#allocation10 + $0xf8] sm:$0xff]  ;;  %s2846_s14 = scalar_lea.vmem [#allocation16], %s4315_s24  ;;  %s2638_s28 = scalar_lea.vmem [#allocation15], %s4315_s24 }
 0x18c   : > { %v3150_v19 = vpack.c.bf16 %v546_v14, %v540_v13  ;;  %v3152_v20 = vpack.c.bf16 %v559_v18, %v553_v17  ;;  %v552_v24 = vld [vmem:[#allocation10 + $0xc0] sm:$0xff]  ;;  %v558_v28 = vld [vmem:[#allocation10 + $0xf0] sm:$0xff]  ;;  %v565_v30 = vld [vmem:[#allocation10 + $0x128] sm:$0xff]  ;;  %p519_p6 = scmp.ge.s32.totalorder %s522_s4, 7  }
 0x18d   : > { %3147 = vmatpush1.bf16.msra.mxu0 %v3146_v61  ;;  %v571_v32 = vld [vmem:[#allocation10 + $0x158] sm:$0xff]  ;;  %v3154_v38 = vpack.c.bf16 %v558_v28, %v552_v24  ;;  %v564_v44 = vld [vmem:[#allocation10 + $0x120] sm:$0xff]  ;;  %v570_v45 = vld [vmem:[#allocation10 + $0x150] sm:$0xff]  ;;  %s3722_s3 = smov (%p519_p6), [#allocation15]   ;;  %s3723_s9 = smov (%p519_p6), [#allocation16]  }
 0x18e   : > { %3149 = vmatprep.subr.bf16.mxu0 %v3148_v12  ;;  %v3156_v39 = vpack.c.bf16 %v571_v32, %v565_v30  ;;  %v577_v49 = vld [vmem:[#allocation10 + $0x188] sm:$0xff]  ;;  %v583_v51 = vld [vmem:[#allocation10 + $0x1b8] sm:$0xff]  ;;  %v3158_v16 = vpack.c.bf16 %v570_v45, %v564_v44  ;;  %v576_v55 = vld [vmem:[#allocation10 + $0x180] sm:$0xff]  ;;  %s2853_s26 = sshll.u32 (%p519_p6), %s3722_s3, 4  ;;  %s2865_s16 = sshll.u32 (%p519_p6), %s3723_s9, 4  ;;  %s2854_s26 = int_to_ptr.vmem [resolvable:$true] %s2853_s26  ;;  %s4544_s16 = int_to_ptr.vmem [resolvable:$true] %s2865_s16 }
 0x18f   : > { %v3160_v54 = vpack.c.bf16 %v583_v51, %v577_v49  ;;  %v582_v56 = vld [vmem:[#allocation10 + $0x1b0] sm:$0xff]  ;;  %v589_v63 = vld [vmem:[#allocation10 + $0x1e8] sm:$0xff]  ;;  %v595_v2 = vld [vmem:[#allocation10 + $0x218] sm:$0xff]  ;;  %v3718_v49 = vmov 1966171168   ;;  %s3638_s17 = scalar_lea.vmem (%p519_p6), %s2854_s26, 896  ;;  %p3643_p8 = scmp.lt.s32.totalorder (%p519_p6), %s2854_s26, %s2854_s26 }
 0x190   : > { %v3162_v6 = vpack.c.bf16 %v582_v56, %v576_v55  ;;  %v3164_v10 = vpack.c.bf16 %v595_v2, %v589_v63  ;;  %v588_v61 = vld [vmem:[#allocation10 + $0x1e0] sm:$0xff]  ;;  %v594_v12 = vld [vmem:[#allocation10 + $0x210] sm:$0xff]  ;;  %v601_v13 = vld [vmem:[#allocation10 + $0x248] sm:$0xff]  ;;  %v878_v51 = vunpack.c.l.s4 %v3718_v49  ;;  %p3639_p7 = scmp.ne.s32.totalorder (%p519_p6), %s2854_s26, %s3638_s17  ;;  %p3644_p9 = scmp.lt.s32.totalorder (%p519_p6), %s3638_s17, %s3638_s17 }
 0x191   : > { %3151 = vmatpush1.bf16.msra.mxu0 %v3150_v19  ;;  %v607_v14 = vld [vmem:[#allocation10 + $0x278] sm:$0xff]  ;;  %v3166_v17 = vpack.c.bf16 %v594_v12, %v588_v61  ;;  %v600_v19 = vld [vmem:[#allocation10 + $0x240] sm:$0xff]  ;;  %v613_v24 = vld [vmem:[#allocation10 + $0x2a8] sm:$0xff] }
 0x192   : > { %3153 = vmatprep.subr.bf16.mxu0 %v3152_v20  ;;  %v3168_v18 = vpack.c.bf16 %v607_v14, %v601_v13  ;;  %v606_v20 = vld [vmem:[#allocation10 + $0x270] sm:$0xff]  ;;  %v619_v28 = vld [vmem:[#allocation10 + $0x2d8] sm:$0xff]  ;;  %v4628_v9 = vld [vmem:[#allocation30_spill] sm:$0xff]  ;;  %p3645_p10 = por (%p519_p6), %p3644_p9, %p3643_p8 }
 0x193   : > { %v3170_v30 = vpack.c.bf16 %v606_v20, %v600_v19  ;;  %v3172_v32 = vpack.c.bf16 %v619_v28, %v613_v24  ;;  %v4035_v45 = vld [vmem:[#allocation2] sm:$0xff]  ;;  %v4629_v5 = vld [vmem:[#allocation29_spill] sm:$0xff]  ;;  %v4631_v3 = vld [vmem:[#allocation31_spill] sm:$0xff] }
 0x194   : > { %v4630_v15 = vld [vmem:[#allocation32_spill] sm:$0xff]  ;;  %v4632_v25 = vld [vmem:[#allocation34_spill] sm:$0xff]  ;;  %v4633_v23 = vld [vmem:[#allocation33_spill] sm:$0xff]  ;;  %p3646_p11 = pnand (%p519_p6), %p3645_p10, %p3639_p7 }
 0x195   : > { %3155 = vmatpush1.bf16.msra.mxu0 %v3154_v38  ;;  %v612_v38 = vld [vmem:[#allocation10 + $0x2a0] sm:$0xff]  ;;  %v4635_v35 = vld [vmem:[#allocation37_spill] sm:$0xff]  ;;  %v4636_v31 = vld [vmem:[#allocation36_spill] sm:$0xff] }
 0x196   : > { %3157 = vmatprep.subr.bf16.mxu0 %v3156_v39  ;;  %v618_v39 = vld [vmem:[#allocation10 + $0x2d0] sm:$0xff]  ;;  %v4634_v4 = vld [vmem:[#allocation38_spill] sm:$0xff]  ;;  %v4637_v29 = vld [vmem:[#allocation35_spill] sm:$0xff] }
 0x197   : > { %v3174_v44 = vpack.c.bf16 %v618_v39, %v612_v38  ;;  %v4638_v40 = vld [vmem:[#allocation40_spill] sm:$0xff]  ;;  %v4639_v43 = vld [vmem:[#allocation39_spill] sm:$0xff]  ;;  %v4640_v50 = vld [vmem:[#allocation42_spill] sm:$0xff] }
 0x198   : > { %v4641_v46 = vld [vmem:[#allocation41_spill] sm:$0xff]  ;;  %v4642_v53 = vld [vmem:[#allocation44_spill] sm:$0xff]  ;;  %v4643_v52 = vld [vmem:[#allocation43_spill] sm:$0xff] }
 0x199   : > { %3159 = vmatpush1.bf16.msra.mxu0 %v3158_v16  ;;  %v624_v16 = vld [vmem:[%s4589_s8] sm:$0x3f] }
 0x19a   : > { %3161 = vmatprep.subr.bf16.mxu0 %v3160_v54  ;;  %v879_v54 = vunpack.c.0.s8 %v878_v51  ;;  %v629_v55 = vrot.slane %v624_v16, %v3986_v62 }
 0x19c   : > { %v882_v56 = vsub.s32 %v879_v54, %v4625_v60 }
 0x19d   : > { %3163 = vmatpush1.bf16.msra.mxu0 %v3162_v6 }
 0x19e   : > { %3165 = vmatprep.subr.bf16.mxu0 %v3164_v10 }
 0x1a1   : > { %3167 = vmatpush1.bf16.msra.mxu0 %v3166_v17 }
 0x1a2   : > { %3169 = vmatprep.subr.bf16.mxu0 %v3168_v18 }
 0x1a5   : > { %3171 = vmatpush1.bf16.msra.mxu0 %v3170_v30 }
 0x1a6   : > { %3173 = vmatprep.subr.bf16.mxu0 %v3172_v32 }
 0x1a9   : > { %3175 = vmatpush1.bf16.msra.mxu0 %v3174_v44 }
 0x1ac   : > { %721 = vmatmul.mubr.f32.vlgmr.msra.gmra.mrb[0].mxu0 %v4035_v45 }
 0x1ad   : > { %862 = vmatprep.mubr.f32.mxu0 %v4596_v11 }
 0x27f   : > { %v722_v63 = vpop.f32.mrb[0].mxu0 }
 0x280   : > { %v723_v2 = vadd.f32 %v722_v63, %v629_v55  ;;  %v4044_v6 = vpop.f32.mrb[1].mxu0 }
 0x281   : > { %4627 = vst [vmem:[#allocation45_spill] sm:$0xff] %v4044_v6 }
 0x282   : > { %v876_v10 = vcombine.high %v723_v2, %v723_v2  ;;  %v883_v61 = vrot.slane %v723_v2, %v882_v56 }
 0x284   : > { %v890_v12 = vrot.slane %v876_v10, %v882_v56  ;;  %v891_v13 = vcombine.high %v883_v61, %v883_v61  ;;  %v899_v14 = vrot.slane %v883_v61, %v882_v56 }
 0x286   : > { %v928_v17 = vrot.slane %v899_v14, %v3986_v62  ;;  %v913_v18 = vrot.slane %v891_v13, %v882_v56  ;;  %v921_v19 = vcombine.high %v899_v14, %v899_v14  ;;  %v906_v20 = vrot.slane %v890_v12, %v882_v56 }
 0x287   : > { %v892_v49 = vcombine.high %v890_v12, %v890_v12 }
 0x288   : > { %v965_v24 = vadd.f32 %v928_v17, %v4628_v9  ;;  %v932_v28 = vrot.slane %v913_v18, %v3986_v62  ;;  %v966_v30 = vadd.f32 %v928_v17, %v4629_v5  ;;  %v936_v32 = vrot.slane %v921_v19, %v3986_v62 }
 0x289   : > { %v944_v51 = vrot.slane %v906_v20, %v3986_v62  ;;  %v923_v16 = vcombine.high %v913_v18, %v913_v18  ;;  %v920_v19 = vrot.slane %v892_v49, %v882_v56 }
 0x28a   : > { %v981_v38 = vmax.f32 %v965_v24, 0.0  ;;  %v967_v39 = vadd.f32 %v932_v28, %v4630_v15  ;;  %v968_v44 = vadd.f32 %v932_v28, %v4631_v3  ;;  %v982_v63 = vmax.f32 %v966_v30, 0.0 }
 0x28b   : > { %v969_v2 = vadd.f32 %v936_v32, %v4632_v25  ;;  %v970_v13 = vadd.f32 %v936_v32, %v4633_v23  ;;  %v973_v14 = vadd.f32 %v944_v51, %v4634_v4  ;;  %v940_v18 = vrot.slane %v923_v16, %v3986_v62 }
 0x28c   : > { %v1003_v54 = vmul.f32 %v4626_v1, %v981_v38  ;;  %v983_v55 = vmax.f32 %v967_v39, 0.0  ;;  %v984_v61 = vmax.f32 %v968_v44, 0.0  ;;  %v1004_v12 = vmul.f32 %v4626_v1, %v982_v63 }
 0x28d   : > { %v985_v17 = vmax.f32 %v969_v2, 0.0  ;;  %v986_v28 = vmax.f32 %v970_v13, 0.0  ;;  %v974_v30 = vadd.f32 %v944_v51, %v4635_v35  ;;  %v989_v38 = vmax.f32 %v973_v14, 0.0 }
 0x28e   : > { %1019 = vadd.xlane.f32.xlu0 %v1003_v54  ;;  %v1005_v10 = vmul.f32 %v4626_v1, %v983_v55  ;;  %v1006_v24 = vmul.f32 %v4626_v1, %v984_v61  ;;  %v971_v32 = vadd.f32 %v940_v18, %v4636_v31  ;;  %v948_v44 = vrot.slane %v920_v19, %v3986_v62 }
 0x28f   : > { %v1007_v39 = vmul.f32 %v4626_v1, %v985_v17  ;;  %v922_v54 = vcombine.high %v906_v20, %v906_v20  ;;  %v1008_v55 = vmul.f32 %v4626_v1, %v986_v28  ;;  %v990_v16 = vmax.f32 %v974_v30, 0.0 }
 0x290   : > { %1023 = vadd.xlane.f32.xlu1 %v1005_v10  ;;  %v972_v56 = vadd.f32 %v940_v18, %v4637_v29  ;;  %v1011_v49 = vmul.f32 %v4626_v1, %v989_v38  ;;  %v987_v63 = vmax.f32 %v971_v32, 0.0  ;;  %v975_v51 = vadd.f32 %v948_v44, %v4638_v40 }
 0x291   : > { %v952_v2 = vrot.slane %v922_v54, %v3986_v62  ;;  %v924_v10 = vcombine.high %v920_v19, %v920_v19  ;;  %v1012_v61 = vmul.f32 %v4626_v1, %v990_v16  ;;  %v976_v20 = vadd.f32 %v948_v44, %v4639_v43 }
 0x292   : > { %1021 = vadd.xlane.f32.xlu0 %v1004_v12  ;;  %v988_v13 = vmax.f32 %v972_v56, 0.0  ;;  %v1009_v14 = vmul.f32 %v4626_v1, %v987_v63  ;;  %v991_v12 = vmax.f32 %v975_v51, 0.0 }
 0x293   : > { %v977_v17 = vadd.f32 %v952_v2, %v4640_v50  ;;  %v956_v18 = vrot.slane %v924_v10, %v3986_v62  ;;  %v992_v28 = vmax.f32 %v976_v20, 0.0  ;;  %v978_v19 = vadd.f32 %v952_v2, %v4641_v46 }
 0x294   : > { %1025 = vadd.xlane.f32.xlu1 %v1006_v24  ;;  %v1010_v24 = vmul.f32 %v4626_v1, %v988_v13  ;;  %v1013_v30 = vmul.f32 %v4626_v1, %v991_v12  ;;  %v1068_v12 = vand.u32 127, %v4644_v57 }
 0x295   : > { %v993_v38 = vmax.f32 %v977_v17, 0.0  ;;  %v1014_v32 = vmul.f32 %v4626_v1, %v992_v28  ;;  %v994_v44 = vmax.f32 %v978_v19, 0.0  ;;  %v980_v54 = vadd.f32 %v956_v18, %v4643_v52 }
 0x296   : > { %1027 = vadd.xlane.f32.xlu0 %v1007_v39  ;;  %v979_v39 = vadd.f32 %v956_v18, %v4642_v53  ;;  %v1073_v18 = vadd.s32 4294967288, %v1068_v12 }
 0x297   : > { %v1016_v56 = vmul.f32 %v4626_v1, %v994_v44 }
 0x298   : > { %1029 = vadd.xlane.f32.xlu1 %v1008_v55  ;;  %v1015_v55 = vmul.f32 %v4626_v1, %v993_v38  ;;  %v995_v16 = vmax.f32 %v979_v39, 0.0  ;;  %v4106_v19 = vsub.s32 %v1073_v18, %v4625_v60  ;;  %v4111_v38 = vsub.s32 %v1068_v12, %v4625_v60 }
 0x29a   : > { %1035 = vadd.xlane.f32.xlu0 %v1011_v49  ;;  %v996_v49 = vmax.f32 %v980_v54, 0.0  ;;  %v1017_v63 = vmul.f32 %v4626_v1, %v995_v16 }
 0x29c   : > { %1037 = vadd.xlane.f32.xlu1 %v1012_v61  ;;  %v1018_v51 = vmul.f32 %v4626_v1, %v996_v49 }
 0x29e   : > { %1031 = vadd.xlane.f32.xlu0 %v1009_v14 }
 0x2a0   : > { %1033 = vadd.xlane.f32.xlu1 %v1010_v24 }
 0x2a2   : > { %1039 = vadd.xlane.f32.xlu0 %v1013_v30 }
 0x2a4   : > { %1041 = vadd.xlane.f32.xlu1 %v1014_v32 }
 0x2a6   : > { %1043 = vadd.xlane.f32.xlu0 %v1015_v55 }
 0x2a8   : > { %1045 = vadd.xlane.f32.xlu1 %v1016_v56 }
 0x2aa   : > { %1047 = vadd.xlane.f32.xlu0 %v1017_v63 }
 0x2ac   : > { %1049 = vadd.xlane.f32.xlu1 %v1018_v51 }
 0x31b   : > { %v4086_v2 = vpop.xlane.xlu0 %1019 }
 0x31c   : > { %v1072_v63 = vrot.slane %v4086_v2, %v4111_v38 }
 0x31d   : > { %v4088_v10 = vpop.xlane.xlu1 %1023 }
 0x31e   : > { %v1083_v54 = vrot.slane %v4088_v10, %v4111_v38 }
 0x31f   : > { %v4090_v61 = vpop.xlane.xlu0 %1021 }
 0x320   : > { %v1077_v55 = vrot.slane %v4090_v61, %v4106_v19 }
 0x321   : > { %v4092_v13 = vpop.xlane.xlu1 %1025 }
 0x322   : > { %v1087_v39 = vrot.slane %v4092_v13, %v4106_v19  ;;  %v1079_v11 = vsel %vm1078_vm7, %v1077_v55, %v1072_v63 }
 0x323   : > { %v4094_v20 = vpop.xlane.xlu0 %1027 }
 0x324   : > { %v1092_v56 = vrot.slane %v4094_v20, %v4111_v38  ;;  %v1088_v51 = vsel %vm1078_vm7, %v1087_v39, %v1083_v54 }
 0x325   : > { %v4096_v14 = vpop.xlane.xlu1 %1029  ;;  %v1143_v4 = vsel %vm428_vm0, %v1088_v51, %v1079_v11 }
 0x326   : > { %v1096_v32 = vrot.slane %v4096_v14, %v4106_v19 }
 0x327   : > { %v4099_v17 = vpop.xlane.xlu0 %1035 }
 0x328   : > { %v1097_v18 = vsel %vm1078_vm7, %v1096_v32, %v1092_v56 }
 0x329   : > { %v4101_v24 = vpop.xlane.xlu1 %1037  ;;  %v1144_v55 = vsel %vm430_vm1, %v1097_v18, %v1143_v4 }
 0x32a   : > { %v1114_v5 = vrot.slane %v4101_v24, %v4106_v19 }
 0x32b   : > { %v4103_v28 = vpop.xlane.xlu0 %1031 }
 0x32c   : > { %v1101_v12 = vrot.slane %v4103_v28, %v4111_v38 }
 0x32d   : > { %v4108_v30 = vpop.xlane.xlu1 %1033 }
 0x32e   : > { %v1105_v16 = vrot.slane %v4108_v30, %v4106_v19 }
 0x32f   : > { %v4117_v44 = vpop.xlane.xlu0 %1039 }
 0x330   : > { %v1106_v1 = vsel %vm1078_vm7, %v1105_v16, %v1101_v12  ;;  %v1119_v54 = vrot.slane %v4117_v44, %v4111_v38  ;;  %v1110_v16 = vrot.slane %v4099_v17, %v4111_v38 }
 0x331   : > { %v4127_v49 = vpop.xlane.xlu1 %1041  ;;  %v1145_v63 = vsel %vm432_vm2, %v1106_v1, %v1144_v55 }
 0x332   : > { %v1123_v3 = vrot.slane %v4127_v49, %v4106_v19  ;;  %v1115_v9 = vsel %vm1078_vm7, %v1114_v5, %v1110_v16 }
 0x333   : > { %v4135_v57 = vpop.xlane.xlu0 %1043  ;;  %v1146_v23 = vsel %vm434_vm3, %v1115_v9, %v1145_v63 }
 0x334   : > { %v1128_v56 = vrot.slane %v4135_v57, %v4111_v38  ;;  %v1124_v51 = vsel %vm1078_vm7, %v1123_v3, %v1119_v54 }
 0x335   : > { %v4144_v39 = vpop.xlane.xlu1 %1045  ;;  %v1147_v25 = vsel %vm436_vm4, %v1124_v51, %v1146_v23  ;;  %v4176_v23 = vsub.s32 5, %v4625_v60  ;;  %v4185_v51 = vsub.s32 6, %v4625_v60 }
 0x336   : > { %v1132_v32 = vrot.slane %v4144_v39, %v4106_v19 }
 0x337   : > { %v4155_v11 = vpop.xlane.xlu0 %1047 }
 0x338   : > { %v1133_v15 = vsel %vm1078_vm7, %v1132_v32, %v1128_v56  ;;  %v1137_v4 = vrot.slane %v4155_v11, %v4111_v38  ;;  %v3719_v32 = vmov 0  }
 0x339   : > { %v4159_v12 = vpop.xlane.xlu1 %1049  ;;  %v1148_v3 = vsel %vm438_vm5, %v1133_v15, %v1147_v25  ;;  %3435 = vset.pattern.permute.xlu0 %v3719_v32  ;;  %3434 = vset.pattern.permute.xlu1 %v3719_v32  ;;  %v4181_v25 = vsub.s32 2, %v4625_v60  ;;  %v4201_v32 = vsub.s32 3, %v4625_v60 }
 0x33a   : > { %v1141_v18 = vrot.slane %v4159_v12, %v4106_v19 }
 0x33c   : > { %v1142_v1 = vsel %vm1078_vm7, %v1141_v18, %v1137_v4 }
 0x33d   : > { %v1149_v54 = vsel %vm440_vm6, %v1142_v1, %v1148_v3 }
 0x33e   : > { %v1152_v5 = vsel %vm1151_vm8, %v1149_v54, -inf }
 0x33f   : > { %1153 = vmax.xlane.f32.xlu0 %v1152_v5 }
 0x3cc   : > { %v1154_v55 = vpop.xlane.xlu0 %1153 }
 0x3cd   : > { %v1159_v16 = vrot.slane %v1154_v55, %v3986_v62  ;;  %v1163_v9 = vrot.slane %v1154_v55, %v3992_v0  ;;  %v4188_v4 = vrot.slane %v1154_v55, %v4176_v23  ;;  %v1167_v3 = vrot.slane %v1154_v55, %v4181_v25 }
 0x3cf   : > { %v1196_v56 = vsub.f32 %v4086_v2, %v1159_v16  ;;  %v1197_v15 = vsub.f32 %v4090_v61, %v1159_v16  ;;  %v1198_v63 = vsub.f32 %v4088_v10, %v1163_v9  ;;  %v1199_v54 = vsub.f32 %v4092_v13, %v1163_v9 }
 0x3d0   : > { %v4193_v61 = vsub.s32 7, %v4625_v60  ;;  %v4196_v10 = vrot.slane %v1154_v55, %v4185_v51  ;;  %v1206_v5 = vsub.f32 %v4117_v44, %v4188_v4  ;;  %v1200_v16 = vsub.f32 %v4094_v20, %v1167_v3 }
 0x3d1   : > { %v1212_v18 = vmul.f32 1.442695, %v1196_v56  ;;  %v1214_v1 = vmul.f32 1.442695, %v1197_v15  ;;  %v1216_v2 = vmul.f32 1.442695, %v1198_v63  ;;  %v1171_v63 = vrot.slane %v1154_v55, %v4201_v32 }
 0x3d2   : > { %v1218_v56 = vmul.f32 1.442695, %v1199_v54  ;;  %v1187_v13 = vrot.slane %v1154_v55, %v4193_v61  ;;  %v1208_v9 = vsub.f32 %v4135_v57, %v4196_v10  ;;  %v1232_v15 = vmul.f32 1.442695, %v1206_v5 }
 0x3d3   : > { %3436 = vpow2.f32 %v1212_v18  ;;  %v1201_v18 = vsub.f32 %v4096_v14, %v1167_v3  ;;  %v4216_v54 = vsub.s32 4, %v4625_v60  ;;  %v1202_v57 = vsub.f32 %v4103_v28, %v1171_v63 }
 0x3d4   : > { %3438 = vpow2.f32 %v1214_v1  ;;  %v1220_v1 = vmul.f32 1.442695, %v1200_v16  ;;  %v1210_v29 = vsub.f32 %v4155_v11, %v1187_v13  ;;  %v1236_v20 = vmul.f32 1.442695, %v1208_v9 }
 0x3d5   : > { %3440 = vpow2.f32 %v1216_v2  ;;  %v1222_v5 = vmul.f32 1.442695, %v1201_v18  ;;  %v1175_v11 = vrot.slane %v1154_v55, %v4216_v54  ;;  %v1203_v16 = vsub.f32 %v4108_v30, %v1171_v63 }
 0x3d6   : > { %3442 = vpow2.f32 %v1218_v56  ;;  %v1240_v3 = vmul.f32 1.442695, %v1210_v29  ;;  %v1224_v56 = vmul.f32 1.442695, %v1202_v57 }
 0x3d7   : > { %3444 = vpow2.f32 %v1232_v15  ;;  %v1204_v15 = vsub.f32 %v4099_v17, %v1175_v11  ;;  %v1226_v18 = vmul.f32 1.442695, %v1203_v16  ;;  %v1205_v55 = vsub.f32 %v4101_v24, %v1175_v11 }
 0x3d8   : > { %3446 = vpow2.f32 %v1220_v1  ;;  %v1209_v24 = vsub.f32 %v4144_v39, %v4196_v10  ;;  %v1211_v16 = vsub.f32 %v4159_v12, %v1187_v13 }
 0x3d9   : > { %3448 = vpow2.f32 %v1236_v20  ;;  %v1228_v63 = vmul.f32 1.442695, %v1204_v15  ;;  %v1207_v20 = vsub.f32 %v4127_v49, %v4188_v4  ;;  %v1230_v57 = vmul.f32 1.442695, %v1205_v55 }
 0x3da   : > { %3450 = vpow2.f32 %v1222_v5  ;;  %v1238_v49 = vmul.f32 1.442695, %v1209_v24 }
 0x3db   : > { %3452 = vpow2.f32 %v1240_v3  ;;  %v1234_v3 = vmul.f32 1.442695, %v1207_v20 }
 0x3dc   : > { %3454 = vpow2.f32 %v1224_v56  ;;  %v1242_v56 = vmul.f32 1.442695, %v1211_v16 }
 0x3dd   : > { %v4209_v44 = vpop.eup %3436  ;;  %3456 = vpow2.f32 %v1226_v18 }
 0x3de   : > { %v4212_v2 = vpop.eup %3438  ;;  %1261 = vperm.xlu1 %3434, %v4209_v44   ;;  %3458 = vpow2.f32 %v1228_v63 }
 0x3df   : > { %1264 = vperm.xlu0 %3435, %v4212_v2   ;;  %v4220_v14 = vpop.eup %3440  ;;  %3460 = vpow2.f32 %v1230_v57 }
 0x3e0   : > { %v4225_v9 = vpop.eup %3442  ;;  %3462 = vpow2.f32 %v1234_v3 }
 0x3e1   : > { %v4228_v28 = vpop.eup %3444  ;;  %3464 = vpow2.f32 %v1238_v49 }
 0x3e2   : > { %1267 = vperm.xlu1 %3434, %v4220_v14   ;;  %v4232_v29 = vpop.eup %3446  ;;  %3466 = vpow2.f32 %v1242_v56 }
 0x3e3   : > { %1291 = vperm.xlu0 %3435, %v4228_v28   ;;  %v4235_v30 = vpop.eup %3448 }
 0x3e4   : > { %v4239_v1 = vpop.eup %3450 }
 0x3e5   : > { %v4242_v17 = vpop.eup %3452 }
 0x3e6   : > { %1270 = vperm.xlu1 %3434, %v4225_v9   ;;  %v4247_v5 = vpop.eup %3454 }
 0x3e7   : > { %1297 = vperm.xlu0 %3435, %v4235_v30   ;;  %v4252_v11 = vpop.eup %3456 }
 0x3e8   : > { %v4256_v4 = vpop.eup %3458 }
 0x3e9   : > { %v4259_v15 = vpop.eup %3460 }
 0x3ea   : > { %1273 = vperm.xlu1 %3434, %v4232_v29   ;;  %v4262_v39 = vpop.eup %3462 }
 0x3eb   : > { %1303 = vperm.xlu0 %3435, %v4242_v17   ;;  %v4265_v10 = vpop.eup %3464 }
 0x3ec   : > { %v4268_v12 = vpop.eup %3466 }
 0x3ee   : > { %1276 = vperm.xlu1 %3434, %v4239_v1  }
 0x3f2   : > { %1279 = vperm.xlu1 %3434, %v4247_v5  }
 0x3f6   : > { %1282 = vperm.xlu1 %3434, %v4252_v11  }
 0x3fa   : > { %1285 = vperm.xlu1 %3434, %v4256_v4  }
 0x3fe   : > { %1288 = vperm.xlu1 %3434, %v4259_v15  }
 0x402   : > { %1294 = vperm.xlu1 %3434, %v4262_v39  }
 0x406   : > { %1300 = vperm.xlu1 %3434, %v4265_v10  }
 0x40a   : > { %1306 = vperm.xlu1 %3434, %v4268_v12  }
 0x45d   : > { %v1262_v13 = vpop.permute.xlu1 %1261 }
 0x45e   : > { %v1265_v24 = vpop.permute.xlu0 %1264  ;;  %v1311_v50 = vrot.slane %v1262_v13, %v4111_v38 }
 0x45f   : > { %v1315_v46 = vrot.slane %v1265_v24, %v4106_v19 }
 0x461   : > { %v1268_v18 = vpop.permute.xlu1 %1267  ;;  %v1316_v13 = vsel %vm1078_vm7, %v1315_v46, %v1311_v50 }
 0x462   : > { %v1292_v49 = vpop.permute.xlu0 %1291  ;;  %v1320_v52 = vrot.slane %v1268_v18, %v4111_v38 }
 0x463   : > { %v1356_v18 = vrot.slane %v1292_v49, %v4111_v38 }
 0x465   : > { %v1271_v55 = vpop.permute.xlu1 %1270 }
 0x466   : > { %v1324_v31 = vrot.slane %v1271_v55, %v4106_v19  ;;  %v1298_v35 = vpop.permute.xlu0 %1297 }
 0x468   : > { %v1325_v42 = vsel %vm1078_vm7, %v1324_v31, %v1320_v52 }
 0x469   : > { %v1274_v63 = vpop.permute.xlu1 %1273  ;;  %v1380_v31 = vsel %vm428_vm0, %v1325_v42, %v1316_v13 }
 0x46a   : > { %v1329_v60 = vrot.slane %v1274_v63, %v4111_v38  ;;  %v1304_v52 = vpop.permute.xlu0 %1303 }
 0x46d   : > { %v1277_v20 = vpop.permute.xlu1 %1276 }
 0x46e   : > { %v1333_v40 = vrot.slane %v1277_v20, %v4106_v19 }
 0x470   : > { %v1334_v20 = vsel %vm1078_vm7, %v1333_v40, %v1329_v60 }
 0x471   : > { %v1280_v57 = vpop.permute.xlu1 %1279  ;;  %v1381_v60 = vsel %vm430_vm1, %v1334_v20, %v1380_v31  ;;  %v537_v20 = vld [vmem:[#allocation10 + $0x48] sm:$0xff] }
 0x472   : > { %v1338_v55 = vrot.slane %v1280_v57, %v4111_v38 }
 0x475   : > { %v1283_v3 = vpop.permute.xlu1 %1282 }
 0x476   : > { %v1342_v53 = vrot.slane %v1283_v3, %v4106_v19 }
 0x478   : > { %v1343_v3 = vsel %vm1078_vm7, %v1342_v53, %v1338_v55  ;;  %v1374_v53 = vrot.slane %v1304_v52, %v4111_v38  ;;  %v531_v55 = vld [vmem:[#allocation10 + $0x18] sm:$0xff]  ;;  %v542_v52 = vld [vmem:[#allocation10 + $0x70] sm:$0xff] }
 0x479   : > { %v1286_v16 = vpop.permute.xlu1 %1285  ;;  %v1382_v50 = vsel %vm432_vm2, %v1343_v3, %v1381_v60  ;;  %v3176_v13 = vpack.c.bf16 %v537_v20, %v531_v55  ;;  %v543_v3 = vld [vmem:[#allocation10 + $0x78] sm:$0xff]  ;;  %v585_v55 = vld [vmem:[#allocation10 + $0x1c8] sm:$0xff] }
 0x47a   : > { %v1347_v24 = vrot.slane %v1286_v16, %v4111_v38  ;;  %v555_v60 = vld [vmem:[#allocation10 + $0xd8] sm:$0xff] }
 0x47b   : > { %3177 = vmatprep.subr.bf16.mxu1 %v3176_v13  ;;  %v578_v13 = vld [vmem:[#allocation10 + $0x190] sm:$0xff] }
 0x47d   : > { %v1289_v56 = vpop.permute.xlu1 %1288 }
 0x47e   : > { %v1351_v6 = vrot.slane %v1289_v56, %v4106_v19  ;;  %v1365_v56 = vrot.slane %v1298_v35, %v4111_v38 }
 0x481   : > { %v1295_v43 = vpop.permute.xlu1 %1294 }
 0x482   : > { %v1360_v41 = vrot.slane %v1295_v43, %v4106_v19  ;;  %v1352_v43 = vsel %vm1078_vm7, %v1351_v6, %v1347_v24  ;;  %v530_v24 = vld [vmem:[#allocation10 + $0x10] sm:$0xff] }
 0x483   : > { %v1383_v35 = vsel %vm434_vm3, %v1352_v43, %v1382_v50  ;;  %v548_v43 = vld [vmem:[#allocation10 + $0xa0] sm:$0xff]  ;;  %v554_v50 = vld [vmem:[#allocation10 + $0xd0] sm:$0xff] }
 0x484   : > { %v1361_v40 = vsel %vm1078_vm7, %v1360_v41, %v1356_v18  ;;  %v536_v18 = vld [vmem:[#allocation10 + $0x40] sm:$0xff] }
 0x485   : > { %v1301_v34 = vpop.permute.xlu1 %1300  ;;  %v1384_v42 = vsel %vm436_vm4, %v1361_v40, %v1383_v35  ;;  %v561_v40 = vld [vmem:[#allocation10 + $0x108] sm:$0xff] }
 0x486   : > { %v1369_v63 = vrot.slane %v1301_v34, %v4106_v19  ;;  %v573_v35 = vld [vmem:[#allocation10 + $0x168] sm:$0xff] }
 0x488   : > { %v1370_v46 = vsel %vm1078_vm7, %v1369_v63, %v1365_v56  ;;  %v549_v63 = vld [vmem:[#allocation10 + $0xa8] sm:$0xff]  ;;  %v3178_v56 = vpack.c.bf16 %v536_v18, %v530_v24  ;;  %v584_v18 = vld [vmem:[#allocation10 + $0x1c0] sm:$0xff] }
 0x489   : > { %v1307_v57 = vpop.permute.xlu1 %1306  ;;  %v1385_v6 = vsel %vm438_vm5, %v1370_v46, %v1384_v42  ;;  %v3180_v31 = vpack.c.bf16 %v549_v63, %v543_v3  ;;  %v3184_v46 = vpack.c.bf16 %v561_v40, %v555_v60  ;;  %v591_v3 = vld [vmem:[#allocation10 + $0x1f8] sm:$0xff]  ;;  %v597_v63 = vld [vmem:[#allocation10 + $0x228] sm:$0xff] }
 0x48a   : > { %v1378_v34 = vrot.slane %v1307_v57, %v4106_v19  ;;  %3179 = vmatpush1.bf16.msra.mxu1 %v3178_v56  ;;  %v3182_v57 = vpack.c.bf16 %v548_v43, %v542_v52  ;;  %v3194_v56 = vpack.c.bf16 %v584_v18, %v578_v13  ;;  %v590_v52 = vld [vmem:[#allocation10 + $0x1f0] sm:$0xff]  ;;  %v596_v43 = vld [vmem:[#allocation10 + $0x220] sm:$0xff]  ;;  %v603_v60 = vld [vmem:[#allocation10 + $0x258] sm:$0xff] }
 0x48b   : > { %3181 = vmatprep.subr.bf16.mxu1 %v3180_v31  ;;  %v3196_v31 = vpack.c.bf16 %v597_v63, %v591_v3  ;;  %v609_v40 = vld [vmem:[#allocation10 + $0x288] sm:$0xff] }
 0x48c   : > { %v1379_v16 = vsel %vm1078_vm7, %v1378_v34, %v1374_v53  ;;  %v560_v53 = vld [vmem:[#allocation10 + $0x100] sm:$0xff]  ;;  %v567_v34 = vld [vmem:[#allocation10 + $0x138] sm:$0xff] }
 0x48d   : > { %v1386_v49 = vsel %vm440_vm6, %v1379_v16, %v1385_v6  ;;  %v3186_v42 = vpack.c.bf16 %v560_v53, %v554_v50  ;;  %v3188_v16 = vpack.c.bf16 %v573_v35, %v567_v34  ;;  %v566_v6 = vld [vmem:[#allocation10 + $0x130] sm:$0xff]  ;;  %v608_v53 = vld [vmem:[#allocation10 + $0x280] sm:$0xff]  ;;  %v615_v34 = vld [vmem:[#allocation10 + $0x2b8] sm:$0xff] }
 0x48e   : > { %v1388_v41 = vsel %vm1151_vm8, %v1386_v49, 0.0  ;;  %3183 = vmatpush1.bf16.msra.mxu1 %v3182_v57  ;;  %v572_v49 = vld [vmem:[#allocation10 + $0x160] sm:$0xff]  ;;  %v3198_v57 = vpack.c.bf16 %v596_v43, %v590_v52  ;;  %v602_v50 = vld [vmem:[#allocation10 + $0x250] sm:$0xff]  ;;  %v621_v35 = vld [vmem:[#allocation10 + $0x2e8] sm:$0xff] }
 0x48f   : > { %1389 = vadd.xlane.f32.xlu0 %v1388_v41  ;;  %3185 = vmatprep.subr.bf16.mxu1 %v3184_v46  ;;  %v579_v41 = vld [vmem:[#allocation10 + $0x198] sm:$0xff]  ;;  %v3190_v20 = vpack.c.bf16 %v572_v49, %v566_v6  ;;  %v3200_v46 = vpack.c.bf16 %v609_v40, %v603_v60  ;;  %v620_v52 = vld [vmem:[#allocation10 + $0x2e0] sm:$0xff]  ;;  %v2641_v40 = vld [vmem:[%s2640_s29] sm:$0xff] }
 0x490   : > { %v3192_v24 = vpack.c.bf16 %v585_v55, %v579_v41 }
 0x492   : > { %3187 = vmatpush1.bf16.msra.mxu1 %v3186_v42  ;;  %v3202_v42 = vpack.c.bf16 %v608_v53, %v602_v50  ;;  %v4645_v50 = vmov 0.0  }
 0x493   : > { %3189 = vmatprep.subr.bf16.mxu1 %v3188_v16  ;;  %v3204_v16 = vpack.c.bf16 %v621_v35, %v615_v34 }
 0x496   : > { %3191 = vmatpush1.bf16.msra.mxu1 %v3190_v20 }
 0x497   : > { %3193 = vmatprep.subr.bf16.mxu1 %v3192_v24 }
 0x49a   : > { %3195 = vmatpush1.bf16.msra.mxu1 %v3194_v56 }
 0x49b   : > { %3197 = vmatprep.subr.bf16.mxu1 %v3196_v31  ;;  %v614_v31 = vld [vmem:[#allocation10 + $0x2b0] sm:$0xff] }
 0x49e   : > { %3199 = vmatpush1.bf16.msra.mxu1 %v3198_v57  ;;  %v3720_v57 = vmov 0.0|0.0  }
 0x49f   : > { %3201 = vmatprep.subr.bf16.mxu1 %v3200_v46 }
 0x4a2   : > { %3203 = vmatpush1.bf16.msra.mxu1 %v3202_v42 }
 0x4a3   : > { %3205 = vmatprep.subr.bf16.mxu1 %v3204_v16 }
 0x51c   : > { %v1390_v6 = vpop.xlane.xlu0 %1389 }
 0x51d   : > { %v1411_v49 = vrot.slane %v1390_v6, %v4216_v54  ;;  %v1395_v41 = vrot.slane %v1390_v6, %v3986_v62  ;;  %v1423_v55 = vrot.slane %v1390_v6, %v4193_v61  ;;  %v1399_v20 = vrot.slane %v1390_v6, %v3992_v0 }
 0x51e   : > { %v1403_v3 = vrot.slane %v1390_v6, %v4181_v25  ;;  %v1415_v34 = vrot.slane %v1390_v6, %v4176_v23 }
 0x51f   : > { %3468 = vrcp.f32 %v1411_v49 }
 0x520   : > { %3470 = vrcp.f32 %v1395_v41 }
 0x521   : > { %3472 = vrcp.f32 %v1423_v55 }
 0x522   : > { %3474 = vrcp.f32 %v1399_v20 }
 0x523   : > { %3476 = vrcp.f32 %v1403_v3 }
 0x529   : > { %v3469_v24 = vpop.eup %3468 }
 0x52a   : > { %v3471_v13 = vpop.eup %3470  ;;  %v4308_v18 = vmul.f32 %v3469_v24, %v4256_v4  ;;  %v3206_v4 = vpack.c.bf16 %v620_v52, %v614_v31 }
 0x52b   : > { %v3473_v63 = vpop.eup %3472  ;;  %v4312_v56 = vmul.f32 %v3471_v13, %v4209_v44  ;;  %v4327_v44 = vmul.f32 %v3471_v13, %v4212_v2  ;;  %v3241_v2 = vpack.c.bf16 %v3893_v27, %v3891_v26 }
 0x52c   : > { %1815 = vperm.xlu0 %3435, %v4308_v18   ;;  %v4320_v43 = vmul.f32 %v3473_v63, %v4242_v17  ;;  %v3475_v60 = vpop.eup %3474  ;;  %3207 = vmatpush1.bf16.msra.mxu1 %v3206_v4  ;;  %v1407_v17 = vrot.slane %v1390_v6, %v4201_v32 }
 0x52d   : > { %1459 = vperm.xlu1 %3434, %v4312_v56   ;;  %3240 = vmatprep.subr.bf16.mxu1 %v3720_v57  ;;  %v4334_v46 = vmul.f32 %v3475_v60, %v4220_v14  ;;  %v1437_v53 = vmul.f32 %v3475_v60, %v4225_v9  ;;  %v3477_v14 = vpop.eup %3476  ;;  %v1419_v9 = vrot.slane %v1390_v6, %v4185_v51 }
 0x52e   : > { %3478 = vrcp.f32 %v1407_v17  ;;  %v1440_v35 = vmul.f32 %v3477_v14, %v4239_v1 }
 0x52f   : > { %792 = vmatmul.mubr.f32.vlgmr.msra.gmra.mrb[0].mxu1 %v4035_v45  ;;  %v4345_v45 = vmul.f32 %v3477_v14, %v4232_v29  ;;  %3480 = vrcp.f32 %v1415_v34  ;;  %v4357_v29 = vmul.f32 %v3469_v24, %v4259_v15  ;;  %v3247_v14 = vpack.c.bf16 %v3906_v48, %v3904_v47 }
 0x530   : > { %2082 = vperm.xlu0 %3435, %v4320_v43   ;;  %3028 = vmatprep.mubr.msk.f32.mxu1 %vm3721_vm9, %v4645_v50  ;;  %3482 = vrcp.f32 %v1419_v9 }
 0x531   : > { %1462 = vperm.xlu1 %3434, %v4327_v44   ;;  %3242 = vmatpush3.bf16.msra.mxu1 %v3241_v2 }
 0x532   : > { %3243 = vmatprep.subr.bf16.mxu1 %v3720_v57 }
 0x534   : > { %2644 = vperm.xlu0 %3435, %v2641_v40  }
 0x535   : > { %1548 = vperm.xlu1 %3434, %v4334_v46  }
 0x538   : > { %v3479_v42 = vpop.eup %3478 }
 0x539   : > { %1551 = vperm.xlu1 %3434, %v1437_v53   ;;  %v4351_v16 = vmul.f32 %v3479_v42, %v4247_v5  ;;  %v1443_v49 = vmul.f32 %v3479_v42, %v4252_v11  ;;  %v3481_v41 = vpop.eup %3480 }
 0x53a   : > { %v4361_v1 = vmul.f32 %v3481_v41, %v4228_v28  ;;  %v4365_v5 = vmul.f32 %v3481_v41, %v4262_v39  ;;  %v3483_v55 = vpop.eup %3482  ;;  %v4377_v28 = vmul.f32 %v3473_v63, %v4268_v12 }
 0x53b   : > { %v4369_v11 = vmul.f32 %v3483_v55, %v4235_v30  ;;  %v4373_v15 = vmul.f32 %v3483_v55, %v4265_v10  ;;  %v3244_v10 = vpack.c.bf16 %v3900_v37, %v3898_v36 }
 0x53d   : > { %1637 = vperm.xlu1 %3434, %v4345_v45  }
 0x541   : > { %1640 = vperm.xlu1 %3434, %v1440_v35  }
 0x545   : > { %1726 = vperm.xlu1 %3434, %v4351_v16  }
 0x549   : > { %1729 = vperm.xlu1 %3434, %v1443_v49  }
 0x54d   : > { %1818 = vperm.xlu1 %3434, %v4357_v29  }
 0x551   : > { %1904 = vperm.xlu1 %3434, %v4361_v1  }
 0x555   : > { %1907 = vperm.xlu1 %3434, %v4365_v5  }
 0x559   : > { %1993 = vperm.xlu1 %3434, %v4369_v11  }
 0x55d   : > { %1996 = vperm.xlu1 %3434, %v4373_v15  }
 0x561   : > { %2085 = vperm.xlu1 %3434, %v4377_v28  }
 0x5ab   : > { %v4380_v39 = vpop.permute.xlu0 %1815 }
 0x5ac   : > { %v1460_v6 = vpop.permute.xlu1 %1459 }
 0x5ad   : > { %v1467_v30 = vrot.slane %v1460_v6, %v4111_v38 }
 0x5af   : > { %v4382_v20 = vpop.permute.xlu0 %2082 }
 0x5b0   : > { %v1463_v24 = vpop.permute.xlu1 %1462 }
 0x5b1   : > { %v1471_v13 = vrot.slane %v1463_v24, %v4106_v19 }
 0x5b3   : > { %v1472_v3 = vsel %vm1078_vm7, %v1471_v13, %v1467_v30  ;;  %v4389_v31 = vpop.permute.xlu0 %2644 }
 0x5b4   : > { %3029 = vmatmul.mubr.msk.f32.vlgmr.msra.gmra.mrb[2].mxu1 %vm1151_vm8, %v1472_v3  ;;  %v1549_v12 = vpop.permute.xlu1 %1548  ;;  %v2649_v63 = vrot.slane %v4389_v31, %v3986_v62  ;;  %v2653_v60 = vrot.slane %v4389_v31, %v3992_v0  ;;  %v2665_v13 = vrot.slane %v4389_v31, %v4216_v54 }
 0x5b5   : > { %3245 = vmatpush3.bf16.msra.mxu1 %v3244_v10  ;;  %3035 = vmatprep.mubr.msk.f32.mxu1 %vm3721_vm9, %v4645_v50  ;;  %v1556_v17 = vrot.slane %v1549_v12, %v4111_v38 }
 0x5b6   : > { %v2687_v52 = vmul.f32 %v2649_v63, %v4327_v44  ;;  %v2686_v4 = vmul.f32 %v2649_v63, %v4312_v56  ;;  %3246 = vmatprep.subr.bf16.mxu1 %v3720_v57  ;;  %v2689_v34 = vmul.f32 %v2653_v60, %v1437_v53  ;;  %v2657_v44 = vrot.slane %v4389_v31, %v4181_v25 }
 0x5b7   : > { %v2688_v42 = vmul.f32 %v2653_v60, %v4334_v46  ;;  %v2661_v53 = vrot.slane %v4389_v31, %v4201_v32  ;;  %v2695_v12 = vmul.f32 %v2665_v13, %v4357_v29  ;;  %v2694_v63 = vmul.f32 %v2665_v13, %v4308_v18 }
 0x5b8   : > { %v1552_v40 = vpop.permute.xlu1 %1551  ;;  %2722 = vperm.xlu0 %3435, %v2687_v52   ;;  %2719 = vperm.xlu1 %3434, %v2686_v4   ;;  %v2691_v41 = vmul.f32 %v2657_v44, %v1440_v35  ;;  %v2690_v55 = vmul.f32 %v2657_v44, %v4345_v45  ;;  %v3250_v35 = vpack.c.bf16 %v3912_v59, %v3910_v58 }
 0x5b9   : > { %v1560_v2 = vrot.slane %v1552_v40, %v4106_v19  ;;  %v2693_v30 = vmul.f32 %v2661_v53, %v1443_v49  ;;  %v2692_v3 = vmul.f32 %v2661_v53, %v4351_v16  ;;  %v2669_v49 = vrot.slane %v4389_v31, %v4176_v23 }
 0x5ba   : > { %v3253_v29 = vpack.c.bf16 %v3922_v8, %v3920_v7  ;;  %v2673_v40 = vrot.slane %v4389_v31, %v4185_v51 }
 0x5bb   : > { %v1561_v56 = vsel %vm1078_vm7, %v1560_v2, %v1556_v17  ;;  %v2697_v60 = vmul.f32 %v2669_v49, %v4365_v5  ;;  %v2696_v2 = vmul.f32 %v2669_v49, %v4361_v1  ;;  %v3256_v5 = vpack.c.bf16 %v3934_v22, %v3932_v21  ;;  %v557_v49 = vld [vmem:[#allocation10 + $0xe8] sm:$0xff] }
 0x5bc   : > { %3036 = vmatmul.mubr.msk.f32.vlgmr.msra.gmra.mrb[4].mxu1 %vm1151_vm8, %v1561_v56  ;;  %v1638_v9 = vpop.permute.xlu1 %1637  ;;  %2728 = vperm.xlu0 %3435, %v2689_v34   ;;  %v2699_v51 = vmul.f32 %v2673_v40, %v4373_v15  ;;  %v2677_v1 = vrot.slane %v4389_v31, %v4193_v61 }
 0x5bd   : > { %2725 = vperm.xlu1 %3434, %v2688_v42   ;;  %3248 = vmatpush3.bf16.msra.mxu1 %v3247_v14  ;;  %v1645_v46 = vrot.slane %v1638_v9, %v4111_v38  ;;  %v1823_v14 = vrot.slane %v4380_v39, %v4111_v38  ;;  %v2698_v39 = vmul.f32 %v2673_v40, %v4369_v11  ;;  %v4646_v9 = vld [vmem:[#allocation25_spill] sm:$0xff] }
 0x5be   : > { %3042 = vmatprep.mubr.msk.f32.mxu1 %vm3721_vm9, %v4645_v50  ;;  %3249 = vmatprep.subr.bf16.mxu1 %v3720_v57  ;;  %v2701_v42 = vmul.f32 %v2677_v1, %v4377_v28  ;;  %v2700_v15 = vmul.f32 %v2677_v1, %v4320_v43  ;;  %v533_v43 = vld [vmem:[#allocation10 + $0x28] sm:$0xff] }
 0x5c0   : > { %v1641_v6 = vpop.permute.xlu1 %1640  ;;  %2734 = vperm.xlu0 %3435, %v2691_v41   ;;  %v3259_v41 = vpack.c.bf16 %v4646_v9, %v3939_v33 }
 0x5c1   : > { %v1649_v24 = vrot.slane %v1641_v6, %v4106_v19  ;;  %2731 = vperm.xlu1 %3434, %v2690_v55   ;;  %v539_v55 = vld [vmem:[#allocation10 + $0x58] sm:$0xff]  ;;  %v532_v6 = vld [vmem:[#allocation10 + $0x20] sm:$0xff] }
 0x5c3   : > { %v1650_v10 = vsel %vm1078_vm7, %v1649_v24, %v1645_v46  ;;  %v3208_v46 = vpack.c.bf16 %v539_v55, %v533_v43  ;;  %v538_v24 = vld [vmem:[#allocation10 + $0x50] sm:$0xff]  ;;  %v2201_v55 = vld [vmem:[#allocation12 + $0x48] sm:$0xff] }
 0x5c4   : > { %3043 = vmatmul.mubr.msk.f32.vlgmr.msra.gmra.mrb[6].mxu1 %vm1151_vm8, %v1650_v10  ;;  %v1727_v45 = vpop.permute.xlu1 %1726  ;;  %2740 = vperm.xlu0 %3435, %v2693_v30   ;;  %v551_v30 = vld [vmem:[#allocation10 + $0xb8] sm:$0xff]  ;;  %v3210_v13 = vpack.c.bf16 %v538_v24, %v532_v6  ;;  %v2205_v6 = vld [vmem:[#allocation12 + $0x68] sm:$0xff]  ;;  %v580_v24 = vld [vmem:[#allocation10 + $0x1a0] sm:$0xff] }
 0x5c5   : > { %2737 = vperm.xlu1 %3434, %v2692_v3   ;;  %3251 = vmatpush3.bf16.msra.mxu1 %v3250_v35  ;;  %v1734_v16 = vrot.slane %v1727_v45, %v4111_v38  ;;  %v545_v35 = vld [vmem:[#allocation10 + $0x88] sm:$0xff]  ;;  %v544_v3 = vld [vmem:[#allocation10 + $0x80] sm:$0xff]  ;;  %v550_v45 = vld [vmem:[#allocation10 + $0xb0] sm:$0xff] }
 0x5c6   : > { %3049 = vmatprep.mubr.msk.f32.mxu1 %vm3721_vm9, %v4645_v50  ;;  %3252 = vmatprep.subr.bf16.mxu1 %v3720_v57  ;;  %v3212_v10 = vpack.c.bf16 %v551_v30, %v545_v35  ;;  %v586_v35 = vld [vmem:[#allocation10 + $0x1d0] sm:$0xff]  ;;  %v3268_v30 = vpack.c.bf16 %v2205_v6, %v2201_v55 }
 0x5c7   : > { %3209 = vmatprep.subr.bf16.mxu0 %v3208_v46  ;;  %v2202_v6 = vld [vmem:[#allocation12 + $0x50] sm:$0xff] }
 0x5c8   : > { %v1730_v52 = vpop.permute.xlu1 %1729  ;;  %2746 = vperm.xlu0 %3435, %v2695_v12   ;;  %3211 = vmatpush1.bf16.msra.mxu0 %v3210_v13  ;;  %v2200_v13 = vld [vmem:[#allocation12 + $0x40] sm:$0xff] }
 0x5c9   : > { %v1738_v4 = vrot.slane %v1730_v52, %v4106_v19  ;;  %2743 = vperm.xlu1 %3434, %v2694_v63   ;;  %v563_v63 = vld [vmem:[#allocation10 + $0x118] sm:$0xff]  ;;  %3213 = vmatprep.subr.bf16.mxu0 %v3212_v10  ;;  %v593_v10 = vld [vmem:[#allocation10 + $0x208] sm:$0xff] }
 0x5cb   : > { %v1739_v17 = vsel %vm1078_vm7, %v1738_v4, %v1734_v16  ;;  %v4647_v4 = vld [vmem:[#allocation26_spill] sm:$0xff] }
 0x5cc   : > { %3050 = vmatmul.mubr.msk.f32.vlgmr.msra.gmra.mrb[8].mxu1 %vm1151_vm8, %v1739_v17  ;;  %v1819_v18 = vpop.permute.xlu1 %1818  ;;  %2752 = vperm.xlu0 %3435, %v2697_v60   ;;  %v3216_v17 = vpack.c.bf16 %v563_v63, %v557_v49  ;;  %v2209_v49 = vld [vmem:[#allocation12 + $0x88] sm:$0xff] }
 0x5cd   : > { %v1827_v34 = vrot.slane %v1819_v18, %v4106_v19  ;;  %3254 = vmatpush3.bf16.msra.mxu1 %v3253_v29  ;;  %2749 = vperm.xlu1 %3434, %v2696_v2   ;;  %v4648_v29 = vld [vmem:[#allocation27_spill] sm:$0xff]  ;;  %v556_v2 = vld [vmem:[#allocation10 + $0xe0] sm:$0xff]  ;;  %v562_v18 = vld [vmem:[#allocation10 + $0x110] sm:$0xff] }
 0x5ce   : > { %3056 = vmatprep.mubr.msk.f32.mxu1 %vm3721_vm9, %v4645_v50  ;;  %3255 = vmatprep.subr.bf16.mxu1 %v3720_v57  ;;  %v3262_v60 = vpack.c.bf16 %v4648_v29, %v4647_v4  ;;  %v2213_v63 = vld [vmem:[#allocation12 + $0xa8] sm:$0xff]  ;;  %v2208_v4 = vld [vmem:[#allocation12 + $0x80] sm:$0xff] }
 0x5cf   : > { %v1828_v44 = vsel %vm1078_vm7, %v1827_v34, %v1823_v14  ;;  %v569_v34 = vld [vmem:[#allocation10 + $0x148] sm:$0xff]  ;;  %v2212_v29 = vld [vmem:[#allocation12 + $0xa0] sm:$0xff] }
 0x5d0   : > { %3057 = vmatmul.mubr.msk.f32.vlgmr.msra.gmra.mrb[10].mxu1 %vm1151_vm8, %v1828_v44  ;;  %v1905_v56 = vpop.permute.xlu1 %1904  ;;  %2758 = vperm.xlu0 %3435, %v2699_v51   ;;  %v2090_v51 = vrot.slane %v4382_v20, %v4111_v38  ;;  %v3218_v44 = vpack.c.bf16 %v562_v18, %v556_v2  ;;  %v2197_v20 = vld [vmem:[#allocation12 + $0x28] sm:$0xff]  ;;  %v611_v2 = vld [vmem:[#allocation10 + $0x298] sm:$0xff]  ;;  %v3274_v18 = vpack.c.bf16 %v2212_v29, %v2208_v4  ;;  %v2216_v29 = vld [vmem:[#allocation12 + $0xc0] sm:$0xff] }
 0x5d1   : > { %2755 = vperm.xlu1 %3434, %v2698_v39   ;;  %3257 = vmatpush3.bf16.msra.mxu1 %v3256_v5  ;;  %v1912_v31 = vrot.slane %v1905_v56, %v4111_v38  ;;  %v575_v5 = vld [vmem:[#allocation10 + $0x178] sm:$0xff] }
 0x5d2   : > { %3063 = vmatprep.mubr.msk.f32.mxu1 %vm3721_vm9, %v4645_v50  ;;  %3258 = vmatprep.subr.bf16.mxu1 %v3720_v57  ;;  %v3220_v56 = vpack.c.bf16 %v575_v5, %v569_v34  ;;  %v604_v5 = vld [vmem:[#allocation10 + $0x260] sm:$0xff]  ;;  %v2223_v4 = vld [vmem:[#allocation12 + $0xf8] sm:$0xff] }
 0x5d4   : > { %v1908_v61 = vpop.permute.xlu1 %1907  ;;  %2764 = vperm.xlu0 %3435, %v2701_v42   ;;  %v568_v42 = vld [vmem:[#allocation10 + $0x140] sm:$0xff] }
 0x5d5   : > { %v1916_v11 = vrot.slane %v1908_v61, %v4106_v19  ;;  %2761 = vperm.xlu1 %3434, %v2700_v15   ;;  %v574_v15 = vld [vmem:[#allocation10 + $0x170] sm:$0xff]  ;;  %v2193_v61 = vld [vmem:[#allocation12 + $0x8] sm:$0xff] }
 0x5d6   : > { %v3264_v9 = vpack.c.bf16 %v2197_v20, %v2193_v61  ;;  %v2195_v61 = vld [vmem:[#allocation12 + $0x18] sm:$0xff] }
 0x5d7   : > { %v1917_v53 = vsel %vm1078_vm7, %v1916_v11, %v1912_v31  ;;  %v581_v31 = vld [vmem:[#allocation10 + $0x1a8] sm:$0xff]  ;;  %v587_v11 = vld [vmem:[#allocation10 + $0x1d8] sm:$0xff] }
 0x5d8   : > { %3064 = vmatmul.mubr.msk.f32.vlgmr.msra.gmra.mrb[12].mxu1 %vm1151_vm8, %v1917_v53  ;;  %v1994_v28 = vpop.permute.xlu1 %1993  ;;  %v2196_v53 = vld [vmem:[#allocation12 + $0x20] sm:$0xff]  ;;  %v3224_v46 = vpack.c.bf16 %v587_v11, %v581_v31  ;;  %v2199_v31 = vld [vmem:[#allocation12 + $0x38] sm:$0xff] }
 0x5d9   : > { %3260 = vmatpush3.bf16.msra.mxu1 %v3259_v41  ;;  %3070 = vmatprep.mubr.msk.f32.mxu1 %vm3721_vm9, %v4645_v50  ;;  %v2001_v52 = vrot.slane %v1994_v28, %v4111_v38  ;;  %v2192_v41 = vld [vmem:[#allocation12] sm:$0xff]  ;;  %v3222_v28 = vpack.c.bf16 %v574_v15, %v568_v42  ;;  %v622_v15 = vld [vmem:[#allocation10 + $0x2f0] sm:$0xff]  ;;  %v3296_v20 = vpack.c.bf16 %v2199_v31, %v2195_v61 }
 0x5da   : > { %3261 = vmatprep.subr.bf16.mxu1 %v3720_v57  ;;  %v3214_v57 = vpack.c.bf16 %v550_v45, %v544_v3  ;;  %v3266_v43 = vpack.c.bf16 %v2196_v53, %v2192_v41  ;;  %v599_v3 = vld [vmem:[#allocation10 + $0x238] sm:$0xff]  ;;  %v2204_v45 = vld [vmem:[#allocation12 + $0x60] sm:$0xff]  ;;  %v2198_v41 = vld [vmem:[#allocation12 + $0x30] sm:$0xff] }
 0x5db   : > { %v616_v42 = vld [vmem:[#allocation10 + $0x2c0] sm:$0xff]  ;;  %v2203_v53 = vld [vmem:[#allocation12 + $0x58] sm:$0xff]  ;;  %v2230_v61 = vld [vmem:[#allocation12 + $0x130] sm:$0xff] }
 0x5dc   : > { %v1997_v12 = vpop.permute.xlu1 %1996  ;;  %3215 = vmatpush1.bf16.msra.mxu0 %v3214_v57  ;;  %v592_v57 = vld [vmem:[#allocation10 + $0x200] sm:$0xff]  ;;  %v3238_v11 = vpack.c.bf16 %v622_v15, %v616_v42  ;;  %v2226_v42 = vld [vmem:[#allocation12 + $0x110] sm:$0xff] }
 0x5dd   : > { %v2005_v16 = vrot.slane %v1997_v12, %v4106_v19  ;;  %3217 = vmatprep.subr.bf16.mxu0 %v3216_v17  ;;  %v3270_v12 = vpack.c.bf16 %v2204_v45, %v2200_v13  ;;  %v605_v17 = vld [vmem:[#allocation10 + $0x268] sm:$0xff]  ;;  %v2214_v45 = vld [vmem:[#allocation12 + $0xb0] sm:$0xff]  ;;  %v3314_v31 = vpack.c.bf16 %v2230_v61, %v2226_v42  ;;  %v2405_v42 = vld [vmem:[#allocation13 + $0x18] sm:$0xff] }
 0x5de   : > { %v3232_v34 = vpack.c.bf16 %v611_v2, %v605_v17  ;;  %v2218_v17 = vld [vmem:[#allocation12 + $0xd0] sm:$0xff] }
 0x5df   : > { %v2006_v40 = vsel %vm1078_vm7, %v2005_v16, %v2001_v52  ;;  %v3226_v52 = vpack.c.bf16 %v586_v35, %v580_v24  ;;  %v3272_v16 = vpack.c.bf16 %v2213_v63, %v2209_v49  ;;  %v2211_v24 = vld [vmem:[#allocation12 + $0x98] sm:$0xff]  ;;  %v2217_v49 = vld [vmem:[#allocation12 + $0xc8] sm:$0xff]  ;;  %v2222_v2 = vld [vmem:[#allocation12 + $0xf0] sm:$0xff] }
 0x5e0   : > { %3071 = vmatmul.mubr.msk.f32.vlgmr.msra.gmra.mrb[14].mxu1 %vm1151_vm8, %v2006_v40  ;;  %v2086_v14 = vpop.permute.xlu1 %2085  ;;  %3219 = vmatpush1.bf16.msra.mxu0 %v3218_v44  ;;  %v598_v40 = vld [vmem:[#allocation10 + $0x230] sm:$0xff]  ;;  %v623_v44 = vld [vmem:[#allocation10 + $0x2f8] sm:$0xff]  ;;  %v2221_v63 = vld [vmem:[#allocation12 + $0xe8] sm:$0xff] }
 0x5e1   : > { %3263 = vmatpush3.bf16.msra.mxu1 %v3262_v60  ;;  %v2094_v1 = vrot.slane %v2086_v14, %v4106_v19  ;;  %3077 = vmatprep.mubr.msk.f32.mxu1 %vm3721_vm9, %v4645_v50  ;;  %v3228_v60 = vpack.c.bf16 %v599_v3, %v593_v10  ;;  %v3230_v14 = vpack.c.bf16 %v598_v40, %v592_v57  ;;  %v2215_v35 = vld [vmem:[#allocation12 + $0xb8] sm:$0xff]  ;;  %v2210_v3 = vld [vmem:[#allocation12 + $0x90] sm:$0xff] }
 0x5e2   : > { %3221 = vmatprep.subr.bf16.mxu0 %v3220_v56  ;;  %3265 = vmatprep.subr.bf16.mxu1 %v3264_v9  ;;  %v2194_v9 = vld [vmem:[#allocation12 + $0x10] sm:$0xff]  ;;  %v3304_v10 = vpack.c.bf16 %v2215_v35, %v2211_v24  ;;  %v2241_v35 = vld [vmem:[#allocation12 + $0x188] sm:$0xff] }
 0x5e3   : > { %v2095_v39 = vsel %vm1078_vm7, %v2094_v1, %v2090_v51  ;;  %v610_v51 = vld [vmem:[#allocation10 + $0x290] sm:$0xff]  ;;  %v617_v1 = vld [vmem:[#allocation10 + $0x2c8] sm:$0xff] }
 0x5e4   : > { %3078 = vmatmul.mubr.msk.f32.vlgmr.msra.gmra.mrb[16].mxu1 %vm1151_vm8, %v2095_v39  ;;  %3223 = vmatpush1.bf16.msra.mxu0 %v3222_v28  ;;  %v3234_v39 = vpack.c.bf16 %v610_v51, %v604_v5  ;;  %v3236_v56 = vpack.c.bf16 %v623_v44, %v617_v1  ;;  %v2207_v28 = vld [vmem:[#allocation12 + $0x78] sm:$0xff]  ;;  %v2238_v24 = vld [vmem:[#allocation12 + $0x170] sm:$0xff] }
 0x5e5   : > { %2320 = vmatprep.mubr.f32.mxu1 %v4645_v50  ;;  %3267 = vmatpush1.bf16.msra.mxu1 %v3266_v43  ;;  %v3298_v43 = vpack.c.bf16 %v2198_v41, %v2194_v9  ;;  %v3300_v55 = vpack.c.bf16 %v2207_v28, %v2203_v53  ;;  %v2227_v5 = vld [vmem:[#allocation12 + $0x118] sm:$0xff]  ;;  %v2232_v28 = vld [vmem:[#allocation12 + $0x140] sm:$0xff] }
 0x5e6   : > { %3269 = vmatprep.subr.bf16.mxu1 %v3268_v30  ;;  %3225 = vmatprep.subr.bf16.mxu0 %v3224_v46  ;;  %v2206_v46 = vld [vmem:[#allocation12 + $0x70] sm:$0xff]  ;;  %v2231_v51 = vld [vmem:[#allocation12 + $0x138] sm:$0xff] }
 0x5e7   : > { %v3504_v30 = vld [vmem:[#allocation2] sm:$0xff]  ;;  %v3302_v13 = vpack.c.bf16 %v2206_v46, %v2202_v6  ;;  %v3312_v44 = vpack.c.bf16 %v2231_v51, %v2227_v5  ;;  %v2235_v9 = vld [vmem:[#allocation12 + $0x158] sm:$0xff] }
 0x5e8   : > { %3227 = vmatpush1.bf16.msra.mxu0 %v3226_v52  ;;  %v2219_v52 = vld [vmem:[#allocation12 + $0xd8] sm:$0xff]  ;;  %v2234_v46 = vld [vmem:[#allocation12 + $0x150] sm:$0xff] }
 0x5e9   : > { %3271 = vmatpush1.bf16.msra.mxu1 %v3270_v12  ;;  %3229 = vmatprep.subr.bf16.mxu0 %v3228_v60  ;;  %v3306_v12 = vpack.c.bf16 %v2214_v45, %v2210_v3  ;;  %v2220_v60 = vld [vmem:[#allocation12 + $0xe0] sm:$0xff]  ;;  %v3308_v57 = vpack.c.bf16 %v2223_v4, %v2219_v52  ;;  %v2239_v53 = vld [vmem:[#allocation12 + $0x178] sm:$0xff]  ;;  %v2242_v52 = vld [vmem:[#allocation12 + $0x190] sm:$0xff] }
 0x5ea   : > { %3273 = vmatprep.subr.bf16.mxu1 %v3272_v16  ;;  %v3276_v16 = vpack.c.bf16 %v2221_v63, %v2217_v49  ;;  %v3278_v40 = vpack.c.bf16 %v2220_v60, %v2216_v29  ;;  %v2247_v3 = vld [vmem:[#allocation12 + $0x1b8] sm:$0xff]  ;;  %v2240_v49 = vld [vmem:[#allocation12 + $0x180] sm:$0xff]  ;;  %v2246_v4 = vld [vmem:[#allocation12 + $0x1b0] sm:$0xff] }
 0x5eb   : > { %v2244_v63 = vld [vmem:[#allocation12 + $0x1a0] sm:$0xff]  ;;  %v3322_v29 = vpack.c.bf16 %v2246_v4, %v2242_v52  ;;  %v2249_v60 = vld [vmem:[#allocation12 + $0x1c8] sm:$0xff]  ;;  %v2250_v51 = vld [vmem:[#allocation12 + $0x1d0] sm:$0xff] }
 0x5ec   : > { %3231 = vmatpush1.bf16.msra.mxu0 %v3230_v14  ;;  %v3310_v14 = vpack.c.bf16 %v2222_v2, %v2218_v17  ;;  %v2255_v2 = vld [vmem:[#allocation12 + $0x1f8] sm:$0xff]  ;;  %v2423_v52 = vld [vmem:[#allocation13 + $0xa8] sm:$0xff] }
 0x5ed   : > { %3275 = vmatpush1.bf16.msra.mxu1 %v3274_v18  ;;  %3233 = vmatprep.subr.bf16.mxu0 %v3232_v34  ;;  %v2225_v18 = vld [vmem:[#allocation12 + $0x108] sm:$0xff] }
 0x5ee   : > { %3277 = vmatprep.subr.bf16.mxu1 %v3276_v16  ;;  %v2229_v34 = vld [vmem:[#allocation12 + $0x128] sm:$0xff]  ;;  %v3290_v16 = vpack.c.bf16 %v2244_v63, %v2240_v49 }
 0x5ef   : > { %v3280_v1 = vpack.c.bf16 %v2229_v34, %v2225_v18  ;;  %v2248_v18 = vld [vmem:[#allocation12 + $0x1c0] sm:$0xff]  ;;  %v2419_v63 = vld [vmem:[#allocation13 + $0x88] sm:$0xff] }
 0x5f0   : > { %3235 = vmatpush1.bf16.msra.mxu0 %v3234_v39  ;;  %v2224_v39 = vld [vmem:[#allocation12 + $0x100] sm:$0xff]  ;;  %v3336_v4 = vpack.c.bf16 %v2423_v52, %v2419_v63  ;;  %v2444_v52 = vld [vmem:[#allocation13 + $0x150] sm:$0xff] }
 0x5f1   : > { %3237 = vmatprep.subr.bf16.mxu0 %v3236_v56  ;;  %3279 = vmatpush1.bf16.msra.mxu1 %v3278_v40  ;;  %v2228_v56 = vld [vmem:[#allocation12 + $0x120] sm:$0xff]  ;;  %v2251_v40 = vld [vmem:[#allocation12 + $0x1d8] sm:$0xff] }
 0x5f2   : > { %v3282_v15 = vpack.c.bf16 %v2228_v56, %v2224_v39  ;;  %3281 = vmatprep.subr.bf16.mxu1 %v3280_v1  ;;  %v3324_v34 = vpack.c.bf16 %v2255_v2, %v2251_v40  ;;  %v2254_v1 = vld [vmem:[#allocation12 + $0x1f0] sm:$0xff]  ;;  %v2407_v56 = vld [vmem:[#allocation13 + $0x28] sm:$0xff]  ;;  %v2446_v63 = vld [vmem:[#allocation13 + $0x160] sm:$0xff] }
 0x5f3   : > { %v3326_v39 = vpack.c.bf16 %v2254_v1, %v2250_v51  ;;  %v2420_v2 = vld [vmem:[#allocation13 + $0x90] sm:$0xff]  ;;  %v2433_v51 = vld [vmem:[#allocation13 + $0xf8] sm:$0xff] }
 0x5f4   : > { %3239 = vmatpush1.bf16.msra.mxu0 %v3238_v11  ;;  %v2233_v11 = vld [vmem:[#allocation12 + $0x148] sm:$0xff] }
 0x5f5   : > { %3297 = vmatprep.subr.bf16.mxu0 %v3296_v20  ;;  %3283 = vmatpush1.bf16.msra.mxu1 %v3282_v15  ;;  %v2237_v20 = vld [vmem:[#allocation12 + $0x168] sm:$0xff]  ;;  %v2409_v15 = vld [vmem:[#allocation13 + $0x38] sm:$0xff] }
 0x5f6   : > { %v3284_v41 = vpack.c.bf16 %v2237_v20, %v2233_v11  ;;  %v527_v11 = vld [vmem:[%s526_s30] sm:$0xff]  ;;  %v2402_v20 = vld [vmem:[#allocation13] sm:$0xff] }
 0x5f7   : > { %863 = vmatmul.mubr.f32.vlgmr.msra.gmra.mrb[2].mxu0 %v3504_v30  ;;  %v3318_v30 = vpack.c.bf16 %v2238_v24, %v2234_v46  ;;  %v2413_v46 = vld [vmem:[#allocation13 + $0x58] sm:$0xff] }
 0x5f8   : > { %3299 = vmatpush1.bf16.msra.mxu0 %v3298_v43  ;;  %2391 = vmatprep.mubr.f32.mxu0 %v4645_v50  ;;  %v2236_v43 = vld [vmem:[#allocation12 + $0x160] sm:$0xff] }
 0x5f9   : > { %3301 = vmatprep.subr.bf16.mxu0 %v3300_v55  ;;  %v3316_v55 = vpack.c.bf16 %v2239_v53, %v2235_v9  ;;  %v3286_v6 = vpack.c.bf16 %v2236_v43, %v2232_v28  ;;  %3285 = vmatprep.subr.bf16.mxu1 %v3284_v41  ;;  %v2406_v9 = vld [vmem:[#allocation13 + $0x20] sm:$0xff]  ;;  %v2404_v53 = vld [vmem:[#allocation13 + $0x10] sm:$0xff] }
 0x5fa   : > { %v3330_v41 = vpack.c.bf16 %v2406_v9, %v2402_v20  ;;  %v2408_v28 = vld [vmem:[#allocation13 + $0x30] sm:$0xff]  ;;  %v2439_v20 = vld [vmem:[#allocation13 + $0x128] sm:$0xff]  ;;  %v2437_v9 = vld [vmem:[#allocation13 + $0x118] sm:$0xff] }
 0x5fb   : > { %3287 = vmatpush1.bf16.msra.mxu1 %v3286_v6  ;;  %v3362_v43 = vpack.c.bf16 %v2408_v28, %v2404_v53  ;;  %v2415_v6 = vld [vmem:[#allocation13 + $0x68] sm:$0xff]  ;;  %v2441_v53 = vld [vmem:[#allocation13 + $0x138] sm:$0xff]  ;;  %v2434_v28 = vld [vmem:[#allocation13 + $0x100] sm:$0xff] }
 0x5fc   : > { %3303 = vmatpush1.bf16.msra.mxu0 %v3302_v13  ;;  %v2245_v13 = vld [vmem:[#allocation12 + $0x1a8] sm:$0xff] }
 0x5fd   : > { %3305 = vmatprep.subr.bf16.mxu0 %v3304_v10  ;;  %v2243_v10 = vld [vmem:[#allocation12 + $0x198] sm:$0xff]  ;;  %v3288_v45 = vpack.c.bf16 %v2245_v13, %v2241_v35  ;;  %v2414_v13 = vld [vmem:[#allocation13 + $0x60] sm:$0xff] }
 0x5fe   : > { %v2417_v35 = vld [vmem:[#allocation13 + $0x78] sm:$0xff] }
 0x5ff   : > { %3289 = vmatprep.subr.bf16.mxu1 %v3288_v45  ;;  %v2412_v45 = vld [vmem:[#allocation13 + $0x50] sm:$0xff] }
 0x600   : > { %3307 = vmatpush1.bf16.msra.mxu0 %v3306_v12  ;;  %v3320_v12 = vpack.c.bf16 %v2247_v3, %v2243_v10  ;;  %3291 = vmatpush1.bf16.msra.mxu1 %v3290_v16  ;;  %v3364_v10 = vpack.c.bf16 %v2417_v35, %v2413_v46  ;;  %v2421_v16 = vld [vmem:[#allocation13 + $0x98] sm:$0xff]  ;;  %v2436_v46 = vld [vmem:[#allocation13 + $0x110] sm:$0xff]  ;;  %v2443_v35 = vld [vmem:[#allocation13 + $0x148] sm:$0xff] }
 0x601   : > { %3309 = vmatprep.subr.bf16.mxu0 %v3308_v57  ;;  %v2253_v57 = vld [vmem:[#allocation12 + $0x1e8] sm:$0xff] }
 0x602   : > { %v3292_v17 = vpack.c.bf16 %v2253_v57, %v2249_v60  ;;  %v2418_v60 = vld [vmem:[#allocation13 + $0x80] sm:$0xff] }
 0x603   : > { %v2422_v57 = vld [vmem:[#allocation13 + $0xa0] sm:$0xff] }
 0x604   : > { %3311 = vmatpush1.bf16.msra.mxu0 %v3310_v14  ;;  %v2252_v14 = vld [vmem:[#allocation12 + $0x1e0] sm:$0xff]  ;;  %3293 = vmatprep.subr.bf16.mxu1 %v3292_v17  ;;  %v3338_v17 = vpack.c.bf16 %v2422_v57, %v2418_v60  ;;  %v2451_v60 = vld [vmem:[#allocation13 + $0x188] sm:$0xff] }
 0x605   : > { %3313 = vmatprep.subr.bf16.mxu0 %v3312_v44  ;;  %v3294_v5 = vpack.c.bf16 %v2252_v14, %v2248_v18  ;;  %v2403_v44 = vld [vmem:[#allocation13 + $0x8] sm:$0xff]  ;;  %v2424_v18 = vld [vmem:[#allocation13 + $0xb0] sm:$0xff] }
 0x606   : > { %v3328_v61 = vpack.c.bf16 %v2407_v56, %v2403_v44  ;;  %v2427_v14 = vld [vmem:[#allocation13 + $0xc8] sm:$0xff]  ;;  %v2430_v56 = vld [vmem:[#allocation13 + $0xe0] sm:$0xff] }
 0x607   : > { %3295 = vmatpush1.bf16.msra.mxu1 %v3294_v5  ;;  %v2429_v5 = vld [vmem:[#allocation13 + $0xd8] sm:$0xff]  ;;  %v2455_v57 = vld [vmem:[#allocation13 + $0x1a8] sm:$0xff] }
 0x608   : > { %3315 = vmatpush1.bf16.msra.mxu0 %v3314_v31  ;;  %v3360_v31 = vpack.c.bf16 %v2409_v15, %v2405_v42  ;;  %3329 = vmatprep.subr.bf16.mxu1 %v3328_v61  ;;  %v3372_v44 = vpack.c.bf16 %v2433_v51, %v2429_v5  ;;  %v2428_v42 = vld [vmem:[#allocation13 + $0xd0] sm:$0xff] }
 0x609   : > { %3317 = vmatprep.subr.bf16.mxu0 %v3316_v55  ;;  %v2411_v55 = vld [vmem:[#allocation13 + $0x48] sm:$0xff]  ;;  %v2432_v61 = vld [vmem:[#allocation13 + $0xf0] sm:$0xff] }
 0x60a   : > { %2321 = vmatmul.mubr.f32.vlgmr.msra.gmra.mrb[0].mxu1 %v527_v11  ;;  %v3332_v24 = vpack.c.bf16 %v2415_v6, %v2411_v55  ;;  %v3376_v55 = vpack.c.bf16 %v2441_v53, %v2437_v9  ;;  %v2458_v9 = vld [vmem:[#allocation13 + $0x1c0] sm:$0xff] }
 0x60b   : > { %3331 = vmatpush1.bf16.msra.mxu1 %v3330_v41  ;;  %2530 = vmatprep.mubr.f32.mxu1 %v4645_v50 }
 0x60c   : > { %3319 = vmatpush1.bf16.msra.mxu0 %v3318_v30  ;;  %v2410_v30 = vld [vmem:[#allocation13 + $0x40] sm:$0xff]  ;;  %3333 = vmatprep.subr.bf16.mxu1 %v3332_v24  ;;  %v2440_v24 = vld [vmem:[#allocation13 + $0x130] sm:$0xff] }
 0x60d   : > { %3321 = vmatprep.subr.bf16.mxu0 %v3320_v12  ;;  %v3334_v3 = vpack.c.bf16 %v2414_v13, %v2410_v30  ;;  %v2416_v12 = vld [vmem:[#allocation13 + $0x70] sm:$0xff]  ;;  %v3378_v30 = vpack.c.bf16 %v2440_v24, %v2436_v46  ;;  %v2447_v13 = vld [vmem:[#allocation13 + $0x168] sm:$0xff] }
 0x60e   : > { %v3366_v49 = vpack.c.bf16 %v2416_v12, %v2412_v45  ;;  %v3348_v45 = vpack.c.bf16 %v2447_v13, %v2443_v35 }
 0x60f   : > { %3335 = vmatpush1.bf16.msra.mxu1 %v3334_v3  ;;  %v2449_v3 = vld [vmem:[#allocation13 + $0x178] sm:$0xff] }
 0x610   : > { %3323 = vmatpush1.bf16.msra.mxu0 %v3322_v29  ;;  %v2425_v29 = vld [vmem:[#allocation13 + $0xb8] sm:$0xff]  ;;  %3337 = vmatprep.subr.bf16.mxu1 %v3336_v4  ;;  %v2448_v4 = vld [vmem:[#allocation13 + $0x170] sm:$0xff] }
 0x611   : > { %3325 = vmatprep.subr.bf16.mxu0 %v3324_v34  ;;  %v3368_v40 = vpack.c.bf16 %v2425_v29, %v2421_v16  ;;  %v3370_v34 = vpack.c.bf16 %v2424_v18, %v2420_v2  ;;  %v3382_v29 = vpack.c.bf16 %v2448_v4, %v2444_v52  ;;  %v3352_v18 = vpack.c.bf16 %v2455_v57, %v2451_v60 }
 0x613   : > { %3339 = vmatpush1.bf16.msra.mxu1 %v3338_v17 }
 0x614   : > { %3327 = vmatpush1.bf16.msra.mxu0 %v3326_v39  ;;  %v2426_v39 = vld [vmem:[#allocation13 + $0xc0] sm:$0xff] }
 0x615   : > { %3361 = vmatprep.subr.bf16.mxu0 %v3360_v31  ;;  %v3342_v15 = vpack.c.bf16 %v2430_v56, %v2426_v39  ;;  %v3374_v31 = vpack.c.bf16 %v2432_v61, %v2428_v42  ;;  %v2459_v42 = vld [vmem:[#allocation13 + $0x1c8] sm:$0xff]  ;;  %v2461_v61 = vld [vmem:[#allocation13 + $0x1d8] sm:$0xff] }
 0x617   : > { %2392 = vmatmul.mubr.f32.vlgmr.msra.gmra.mrb[2].mxu0 %v527_v11  ;;  %v2435_v11 = vld [vmem:[#allocation13 + $0x108] sm:$0xff] }
 0x618   : > { %3363 = vmatpush1.bf16.msra.mxu0 %v3362_v43  ;;  %2601 = vmatprep.mubr.f32.mxu0 %v4645_v50  ;;  %v2431_v50 = vld [vmem:[#allocation13 + $0xe8] sm:$0xff]  ;;  %v3344_v41 = vpack.c.bf16 %v2439_v20, %v2435_v11  ;;  %v2438_v43 = vld [vmem:[#allocation13 + $0x120] sm:$0xff]  ;;  %v2465_v20 = vld [vmem:[#allocation13 + $0x1f8] sm:$0xff] }
 0x619   : > { %3365 = vmatprep.subr.bf16.mxu0 %v3364_v10  ;;  %v3340_v1 = vpack.c.bf16 %v2431_v50, %v2427_v14  ;;  %v3346_v6 = vpack.c.bf16 %v2438_v43, %v2434_v28  ;;  %v2445_v10 = vld [vmem:[#allocation13 + $0x158] sm:$0xff]  ;;  %v2454_v50 = vld [vmem:[#allocation13 + $0x1a0] sm:$0xff]  ;;  %v3388_v53 = vpack.c.bf16 %v2465_v20, %v2461_v61  ;;  %v2460_v43 = vld [vmem:[#allocation13 + $0x1d0] sm:$0xff] }
 0x61a   : > { %v3380_v12 = vpack.c.bf16 %v2449_v3, %v2445_v10  ;;  %v2457_v14 = vld [vmem:[#allocation13 + $0x1b8] sm:$0xff] }
 0x61b   : > { %3341 = vmatprep.subr.bf16.mxu1 %v3340_v1  ;;  %v2452_v1 = vld [vmem:[#allocation13 + $0x190] sm:$0xff] }
 0x61c   : > { %3367 = vmatpush1.bf16.msra.mxu0 %v3366_v49  ;;  %3343 = vmatpush1.bf16.msra.mxu1 %v3342_v15  ;;  %v2442_v49 = vld [vmem:[#allocation13 + $0x140] sm:$0xff]  ;;  %v2463_v15 = vld [vmem:[#allocation13 + $0x1e8] sm:$0xff] }
 0x61d   : > { %3369 = vmatprep.subr.bf16.mxu0 %v3368_v40  ;;  %3345 = vmatprep.subr.bf16.mxu1 %v3344_v41  ;;  %v3350_v16 = vpack.c.bf16 %v2446_v63, %v2442_v49  ;;  %v2453_v40 = vld [vmem:[#allocation13 + $0x198] sm:$0xff]  ;;  %v3356_v11 = vpack.c.bf16 %v2463_v15, %v2459_v42  ;;  %v2462_v41 = vld [vmem:[#allocation13 + $0x1e0] sm:$0xff] }
 0x61e   : > { %v3384_v5 = vpack.c.bf16 %v2457_v14, %v2453_v40  ;;  %v3358_v28 = vpack.c.bf16 %v2462_v41, %v2458_v9 }
 0x620   : > { %3371 = vmatpush1.bf16.msra.mxu0 %v3370_v34  ;;  %3347 = vmatpush1.bf16.msra.mxu1 %v3346_v6  ;;  %v2450_v34 = vld [vmem:[#allocation13 + $0x180] sm:$0xff] }
 0x621   : > { %3373 = vmatprep.subr.bf16.mxu0 %v3372_v44  ;;  %3349 = vmatprep.subr.bf16.mxu1 %v3348_v45  ;;  %v3354_v51 = vpack.c.bf16 %v2454_v50, %v2450_v34  ;;  %v2456_v44 = vld [vmem:[#allocation13 + $0x1b0] sm:$0xff] }
 0x622   : > { %v3386_v39 = vpack.c.bf16 %v2456_v44, %v2452_v1 }
 0x624   : > { %3375 = vmatpush1.bf16.msra.mxu0 %v3374_v31  ;;  %3351 = vmatpush1.bf16.msra.mxu1 %v3350_v16 }
 0x625   : > { %3377 = vmatprep.subr.bf16.mxu0 %v3376_v55  ;;  %3353 = vmatprep.subr.bf16.mxu1 %v3352_v18  ;;  %v2464_v55 = vld [vmem:[#allocation13 + $0x1f0] sm:$0xff] }
 0x626   : > { %v3390_v6 = vpack.c.bf16 %v2464_v55, %v2460_v43 }
 0x628   : > { %3379 = vmatpush1.bf16.msra.mxu0 %v3378_v30  ;;  %3355 = vmatpush1.bf16.msra.mxu1 %v3354_v51 }
 0x629   : > { %3381 = vmatprep.subr.bf16.mxu0 %v3380_v12  ;;  %3357 = vmatprep.subr.bf16.mxu1 %v3356_v11 }
 0x62c   : > { %3383 = vmatpush1.bf16.msra.mxu0 %v3382_v29  ;;  %3359 = vmatpush1.bf16.msra.mxu1 %v3358_v28 }
 0x62d   : > { %3385 = vmatprep.subr.bf16.mxu0 %v3384_v5 }
 0x630   : > { %3387 = vmatpush1.bf16.msra.mxu0 %v3386_v39 }
 0x631   : > { %3389 = vmatprep.subr.bf16.mxu0 %v3388_v53 }
 0x634   : > { %3391 = vmatpush1.bf16.msra.mxu0 %v3390_v6 }
 0x637   : > { %v2723_v17 = vpop.permute.xlu0 %2722  ;;  %v2720_v2 = vpop.permute.xlu1 %2719 }
 0x638   : > { %v2773_v16 = vrot.slane %v2723_v17, %v4106_v19  ;;  %v2769_v4 = vrot.slane %v2720_v2, %v4111_v38 }
 0x63a   : > { %v2774_v51 = vsel %vm1078_vm7, %v2773_v16, %v2769_v4 }
 0x63b   : > { %v2729_v56 = vpop.permute.xlu0 %2728 }
 0x63c   : > { %v2726_v31 = vpop.permute.xlu1 %2725  ;;  %v2782_v3 = vrot.slane %v2729_v56, %v4106_v19 }
 0x63d   : > { %v2778_v45 = vrot.slane %v2726_v31, %v4111_v38 }
 0x63f   : > { %v2735_v46 = vpop.permute.xlu0 %2734  ;;  %v2783_v18 = vsel %vm1078_vm7, %v2782_v3, %v2778_v45  ;;  %v4649_v3 = vld [vmem:[#allocation45_spill] sm:$0xff] }
 0x640   : > { %v2732_v24 = vpop.permute.xlu1 %2731  ;;  %v2791_v49 = vrot.slane %v2735_v46, %v4106_v19  ;;  %v2838_v39 = vsel %vm428_vm0, %v2783_v18, %v2774_v51 }
 0x641   : > { %v2787_v63 = vrot.slane %v2732_v24, %v4111_v38 }
 0x643   : > { %v2741_v35 = vpop.permute.xlu0 %2740  ;;  %v2792_v5 = vsel %vm1078_vm7, %v2791_v49, %v2787_v63 }
 0x644   : > { %v2738_v30 = vpop.permute.xlu1 %2737  ;;  %v2800_v29 = vrot.slane %v2741_v35, %v4106_v19  ;;  %v2839_v42 = vsel %vm430_vm1, %v2792_v5, %v2838_v39 }
 0x645   : > { %v2796_v60 = vrot.slane %v2738_v30, %v4111_v38 }
 0x647   : > { %v2747_v13 = vpop.permute.xlu0 %2746  ;;  %v2801_v1 = vsel %vm1078_vm7, %v2800_v29, %v2796_v60 }
 0x648   : > { %v2744_v10 = vpop.permute.xlu1 %2743  ;;  %v2809_v57 = vrot.slane %v2747_v13, %v4106_v19  ;;  %v2840_v31 = vsel %vm432_vm2, %v2801_v1, %v2839_v42 }
 0x649   : > { %v2805_v40 = vrot.slane %v2744_v10, %v4111_v38 }
 0x64b   : > { %v2753_v12 = vpop.permute.xlu0 %2752  ;;  %v2810_v56 = vsel %vm1078_vm7, %v2809_v57, %v2805_v40 }
 0x64c   : > { %v2750_v52 = vpop.permute.xlu1 %2749  ;;  %v2818_v14 = vrot.slane %v2753_v12, %v4106_v19  ;;  %v2841_v41 = vsel %vm434_vm3, %v2810_v56, %v2840_v31 }
 0x64d   : > { %v2814_v34 = vrot.slane %v2750_v52, %v4111_v38 }
 0x64f   : > { %v2759_v50 = vpop.permute.xlu0 %2758  ;;  %v2819_v15 = vsel %vm1078_vm7, %v2818_v14, %v2814_v34 }
 0x650   : > { %v2827_v17 = vrot.slane %v2759_v50, %v4106_v19  ;;  %v2756_v2 = vpop.permute.xlu1 %2755  ;;  %v2842_v28 = vsel %vm436_vm4, %v2819_v15, %v2841_v41 }
 0x651   : > { %v2823_v44 = vrot.slane %v2756_v2, %v4111_v38 }
 0x653   : > { %v2765_v61 = vpop.permute.xlu0 %2764  ;;  %v2828_v11 = vsel %vm1078_vm7, %v2827_v17, %v2823_v44 }
 0x654   : > { %v2836_v20 = vrot.slane %v2765_v61, %v4106_v19  ;;  %v2762_v9 = vpop.permute.xlu1 %2761  ;;  %v2843_v43 = vsel %vm438_vm5, %v2828_v11, %v2842_v28 }
 0x655   : > { %v2832_v53 = vrot.slane %v2762_v9, %v4111_v38  ;;  %v3505_v38 = vld [vmem:[%s4589_s8] sm:$0x3f] }
 0x656   : > { %v633_v10 = vrot.slane %v3505_v38, %v3992_v0  ;;  %v637_v41 = vrot.slane %v3505_v38, %v4181_v25 }
 0x657   : > { %v2837_v55 = vsel %vm1078_vm7, %v2836_v20, %v2832_v53  ;;  %v641_v53 = vrot.slane %v3505_v38, %v4201_v32 }
 0x658   : > { %v2844_v6 = vsel %vm440_vm6, %v2837_v55, %v2843_v43  ;;  %v725_v45 = vadd.f32 %v4649_v3, %v633_v10  ;;  %v645_v10 = vrot.slane %v3505_v38, %v4216_v54 }
 0x659   : > { %2847 = vst.msk [vmem:[%s2846_s14] sm:$0xff] %vm1151_vm8, %v2844_v6 }
 0x65a   : > { %v2899_v16 = vmul.f32 -1.442695, %v725_v45 }
 0x65c   : > { %3484 = vpow2.f32 %v2899_v16  ;;  %v524_v16 = vld [vmem:[#allocation3] sm:$0xff] }
 0x666   : > { %v3485_v50 = vpop.eup %3484 }
 0x667   : > { %v872_v17 = vadd.f32 1.0, %v3485_v50 }
 0x669   : > { %3486 = vrcp.f32 %v872_v17 }
 0x673   : > { %v3487_v11 = vpop.eup %3486 }
 0x687   : > { %v1541_v46 = vpop.f32.mrb[2].mxu1 }
 0x688   : > { %v3030_v24 = vpop.f32.mrb[3].mxu1 }
 0x68f   : > { %v1630_v35 = vpop.f32.mrb[4].mxu1 }
 0x690   : > { %v2176_v19 = vrot.slane %v1630_v35, 7  ;;  %v3037_v30 = vpop.f32.mrb[5].mxu1 }
 0x691   : > { %v649_v30 = vrot.slane %v3505_v38, %v4176_v23 }
 0x692   : > { %v2177_v13 = vsel %vm428_vm0, %v2176_v19, %v1541_v46 }
 0x697   : > { %v1719_v12 = vpop.f32.mrb[6].mxu1 }
 0x698   : > { %v2178_v49 = vrot.slane %v1719_v12, 6  ;;  %v3044_v63 = vpop.f32.mrb[7].mxu1 }
 0x69a   : > { %v2179_v52 = vsel %vm430_vm1, %v2178_v49, %v2177_v13 }
 0x69f   : > { %v1808_v4 = vpop.f32.mrb[8].mxu1 }
 0x6a0   : > { %v2180_v29 = vrot.slane %v1808_v4, 5  ;;  %v3051_v60 = vpop.f32.mrb[9].mxu1 }
 0x6a2   : > { %v2181_v57 = vsel %vm432_vm2, %v2180_v29, %v2179_v52 }
 0x6a3   : > { %v1897_v40 = vpop.f32.mrb[10].mxu1 }
 0x6a4   : > { %v2182_v18 = vrot.slane %v1897_v40, 4  ;;  %v3058_v14 = vpop.f32.mrb[11].mxu1 }
 0x6a6   : > { %v2183_v34 = vsel %vm434_vm3, %v2182_v18, %v2181_v57 }
 0x6ab   : > { %v1986_v5 = vpop.f32.mrb[12].mxu1 }
 0x6ac   : > { %v2184_v2 = vrot.slane %v1986_v5, 3  ;;  %v3065_v51 = vpop.f32.mrb[13].mxu1 }
 0x6ae   : > { %v2185_v1 = vsel %vm436_vm4, %v2184_v2, %v2183_v34 }
 0x6b3   : > { %v2075_v44 = vpop.f32.mrb[14].mxu1 }
 0x6b4   : > { %v2186_v39 = vrot.slane %v2075_v44, 2  ;;  %v3072_v56 = vpop.f32.mrb[15].mxu1 }
 0x6b6   : > { %v2187_v42 = vsel %vm438_vm5, %v2186_v39, %v2185_v1 }
 0x6b7   : > { %v2164_v15 = vpop.f32.mrb[16].mxu1 }
 0x6b8   : > { %v2188_v61 = vrot.slane %v2164_v15, 1  ;;  %v3079_v31 = vpop.f32.mrb[17].mxu1 }
 0x6ba   : > { %v2189_v20 = vsel %vm440_vm6, %v2188_v61, %v2187_v42 }
 0x6bb   : > { %v2191_v9 = vmul.f32 %v3487_v11, %v2189_v20 }
 0x6bd   : > { %2531 = vmatmul.mubr.f32.vlgmr.msra.gmra.mrb[0].mxu1 %v2191_v9  ;;  %2602 = vmatmul.mubr.f32.vlgmr.msra.gmra.mrb[2].mxu0 %v2191_v9 }
 0x790   : > { %v2532_v28 = vpop.f32.mrb[0].mxu1  ;;  %v2603_v43 = vpop.f32.mrb[2].mxu0 }
 0x791   : > { %v3392_v55 = vadd.f32 %v2532_v28, %v637_v41  ;;  %v2534_v6 = vpop.f32.mrb[1].mxu1  ;;  %v2605_v46 = vpop.f32.mrb[3].mxu0  ;;  %v3394_v45 = vadd.f32 %v2603_v43, %v645_v10 }
 0x792   : > { %v3393_v24 = vadd.f32 %v2534_v6, %v641_v53  ;;  %v3395_v13 = vadd.f32 %v2605_v46, %v649_v30 }
 0x793   : > { %v2909_v35 = vmul.f32 -1.442695, %v3392_v55 }
 0x794   : > { %v2910_v19 = vmul.f32 -1.442695, %v3393_v24  ;;  %v2911_v3 = vmul.f32 -1.442695, %v3395_v13 }
 0x795   : > { %3488 = vpow2.f32 %v2909_v35 }
 0x796   : > { %3490 = vpow2.f32 %v2910_v19 }
 0x797   : > { %3492 = vpow2.f32 %v2911_v3 }
 0x798   : > { %3494 = vtanh.f32 %v3394_v45 }
 0x79f   : > { %v3489_v25 = vpop.eup %3488 }
 0x7a0   : > { %v3491_v12 = vpop.eup %3490  ;;  %v2615_v32 = vadd.f32 1.0, %v3489_v25 }
 0x7a1   : > { %v2621_v49 = vadd.f32 1.0, %v3491_v12  ;;  %v3493_v63 = vpop.eup %3492 }
 0x7a2   : > { %3496 = vrcp.f32 %v2615_v32  ;;  %v3495_v52 = vpop.eup %3494  ;;  %v2628_v60 = vadd.f32 1.0, %v3493_v63 }
 0x7a3   : > { %3498 = vrcp.f32 %v2621_v49 }
 0x7a4   : > { %3500 = vrcp.f32 %v2628_v60 }
 0x7ac   : > { %v3497_v23 = vpop.eup %3496 }
 0x7ad   : > { %v3499_v4 = vpop.eup %3498  ;;  %v2632_v29 = vmul.f32 %v3497_v23, %v3495_v52 }
 0x7ae   : > { %v2631_v57 = vmul.f32 %v3499_v4, %v524_v16  ;;  %v3501_v38 = vpop.eup %3500 }
 0x7b0   : > { %v2633_v54 = vadd.f32 %v2632_v29, %v2631_v57 }
 0x7b2   : > { %3502 = vtanh.f32 %v2633_v54  ;;  %2637 = vst [vmem:[#allocation3] sm:$0xff] %v2633_v54 }
 0x7b9   :  { %521 = sbr.rel (!%p519_p6) target bundleno = 392 (0x188), region = 111 }
 0x7bc   : > { %v3503_v40 = vpop.eup %3502 }
 0x7bd   : > { %v2635_v18 = vmul.f32 %v3503_v40, %v3501_v38 }
 0x7bf   : > { %2636 = vst [vmem:[#allocation2] sm:$0xff] %v2635_v18  ;;  %2639 = vst [vmem:[%s2638_s28] sm:$0xff] %v2635_v18 }
 0x7c0   :  { %3649 = shalt.err (!%p3646_p11)
}
 0x7c1   :  { %s3650_s11 = scalar_lea.hbm %s4593_s12, 896 }
 0x7c2   :  { %p3651_p12 = scmp.ne.s32.totalorder %s4593_s12, %s3650_s11  ;;  %p3654_p13 = scmp.lt.u32.totalorder %s3650_s11, %s4593_s12 }
 0x7c4   :  { %p3656_p0 = pnand %p3654_p13, %p3651_p12 }
 0x7c6   :  { %3659 = shalt.err (!%p3656_p0)
}
 0x7c7   :  { %2859 = dma.vmem_to_hbm [thread:$0]  %s2854_s26, 896, %s4593_s12, [#allocation6], %s3704_s20, %s3704_s20, %s3705_s21  }
 0x7c8   :  { %s3660_s6 = scalar_lea.vmem %s4544_s16, 896  ;;  %p3665_p2 = scmp.lt.s32.totalorder %s4544_s16, %s4544_s16 }
 0x7c9   :  { %p3661_p1 = scmp.ne.s32.totalorder %s4544_s16, %s3660_s6  ;;  %p3666_p3 = scmp.lt.s32.totalorder %s3660_s6, %s3660_s6 }
 0x7cb   :  { %p3667_p4 = por %p3666_p3, %p3665_p2 }
 0x7cd   :  { %p3668_p5 = pnand %p3667_p4, %p3661_p1 }
 0x7cf   :  { %3671 = shalt.err (!%p3668_p5)
}
 0x7d0   :  { %s3672_s25 = scalar_lea.hbm %s4594_s13, 896 }
 0x7d1   :  { %p3673_p6 = scmp.ne.s32.totalorder %s4594_s13, %s3672_s25  ;;  %p3676_p7 = scmp.lt.u32.totalorder %s3672_s25, %s4594_s13 }
 0x7d3   :  { %p3678_p8 = pnand %p3676_p7, %p3673_p6 }
 0x7d5   :  { %3681 = shalt.err (!%p3678_p8)
}
 0x7d6   :  { %2871 = dma.vmem_to_hbm [thread:$0]  %s4544_s16, 896, %s4594_s13, [#allocation17], %s3704_s20, %s3704_s20, %s3705_s21  }
 0x7d7   :  { %3694 = dma.done.wait [#allocation6], 896  }
 0x7d8   :  { %3695 = vsyncadd [#allocation6], 4294966400 }
 0x7d9   :  { %3696 = dma.done.wait [#allocation17], 896  }
 0x7da   :  { %3697 = vsyncadd [#allocation17], 4294966400 }
 0x7db   :  { %2878 = vsyncpa [#allocation5], 1 }
 0x7dc   :  { %2879 = vsyncpa [#allocation8], 1 }
 0x7dd   :  { %2880 = vsyncpa [#allocation11], 1 }
 0x7de   :  { %2881 = vsyncpa [#allocation14], 1 }
 0x7df   :  { %2882 = vsyncpa [#allocation6], 1 }
 0x7e0   :  { %2883 = vsyncpa [#allocation17], 1 }

</bundles_post_ra>
